<compile_context>
chip_gen: v7x
topology: tpu7x:2x2x1
jax: 0.10.0
libtpu: 0.0.40
codegen_flags: <defaults>
</compile_context>

<pallas_src>
import functools

import jax
import jax.numpy as jnp
from jax import lax
from jax.experimental import pallas as pl
from jax.experimental.pallas import tpu as pltpu

_LANE = 128


def _round_up(x, m):
    return (x + m - 1) // m * m


def _pick_row_tile(OH, OW, W, KH, stride, cip, cop, in_itemsize, out_itemsize,
                   vmem_budget_bytes=4 * 1024 * 1024,
                   acc_budget_bytes=96 * 1024):
    """Largest divisor of OH whose per-step working set fits the budgets.

    Keeps the double-buffered input window + output tile well under the
    scoped-VMEM default (also on v7x, 64 MiB physical) and the live f32
    accumulator small enough not to spill the 64x4KiB vreg file.
    """
    for th in range(OH, 0, -1):
        if OH % th:
            continue
        ih = (th - 1) * stride + KH
        vmem = (2 * ih * W * cip * in_itemsize       # double-buffered input window
                + 2 * th * OW * cop * out_itemsize   # double-buffered output tile
                + th * OW * cip * 4)                 # f32 depthwise accumulator
        acc = th * OW * cip * 4
        if vmem <= vmem_budget_bytes and acc <= acc_budget_bytes:
            return th
    return 1


def _ds_conv_kernel(x_hbm, wd_ref, wp_ref, o_ref, xbuf, sem, *,
                    stride, th, mxu_dtype):
    # x_hbm : (N, H, W, CIP)   HBM (pl.ANY) -- manual double-buffered DMA
    # wd_ref: (KH, KW, CIP)    VMEM
    # wp_ref: (CIP, COP)       VMEM
    # o_ref : (1, TH, OW, COP) VMEM
    # xbuf  : (2, IH, W, CIP)  VMEM scratch (double buffer)
    # sem   : DMA semaphores (2,)
    n = pl.program_id(0)
    i = pl.program_id(1)
    n_th = pl.num_programs(1)

    _, ih, _, cip = xbuf.shape
    kh_n, kw_n, _ = wd_ref.shape
    _, _, ow, _ = o_ref.shape

    rows_per_tile = th * stride

    def fetch(tile_idx, slot_):
        row0 = tile_idx * rows_per_tile
        pltpu.make_async_copy(x_hbm.at[n, pl.ds(row0, ih)],
                              xbuf.at[slot_], sem.at[slot_]).start()

    slot = i % 2

    # Prime at the first row-tile of each image.  The row axis is marked
    # "arbitrary" so successive i for a given n run in order on the same core
    # (the batch axis stays "parallel" for megacore).
    @pl.when(i == 0)
    def _():
        fetch(0, 0)

    # Wait for the current tile's input window, then prefetch the next tile
    # of the same image into the other slot so its DMA overlaps this compute.
    pltpu.make_async_copy(x_hbm.at[n, pl.ds(i * rows_per_tile, ih)],
                          xbuf.at[slot], sem.at[slot]).wait()

    @pl.when(i + 1 < n_th)
    def _():
        fetch(i + 1, 1 - slot)

    # ---- depthwise KxK, stride s, VALID: per-channel multiply-accumulate ----
    wd = wd_ref[...].astype(jnp.float32)             # (KH, KW, CIP), tiny
    acc = jnp.zeros((th, ow, cip), jnp.float32)
    for kh in range(kh_n):                           # small static unrolled loops
        if stride == 1:
            # One contiguous row-load per kh; unit-stride W slices per kw.
            rows = xbuf[slot, pl.ds(kh, th), :, :].astype(jnp.float32)  # (TH, W, CIP)
            for kw in range(kw_n):
                acc = acc + rows[:, kw:kw + ow, :] * wd[kh, kw, :]
        else:
            # Strided windows read straight from the VMEM ref (load unit),
            # avoiding per-kw XLU relayout slices of an in-register array.
            for kw in range(kw_n):
                patch = xbuf[slot, pl.ds(kh, th, stride),
                             pl.ds(kw, ow, stride), :].astype(jnp.float32)
                acc = acc + patch * wd[kh, kw, :]

    # ---- pointwise 1x1: contract the channel axis on the MXU (f32 acc) ----
    lhs = acc.astype(mxu_dtype)
    rhs = wp_ref[...].astype(mxu_dtype)
    out = lax.dot_general(lhs, rhs,
                          dimension_numbers=(((2,), (0,)), ((), ())),
                          preferred_element_type=jnp.float32)   # (TH, OW, COP)
    o_ref[0] = out.astype(o_ref.dtype)


def depthwise_separable_conv(x_nchw, w_dw, w_pw, *, stride, row_tile=None,
                             mxu_dtype=jnp.bfloat16):
    """x_nchw: (N, Cin, H, W); w_dw: (Cin, 1, KH, KW); w_pw: (Cout, Cin, 1, 1).
    Returns (N, Cout, OH, OW), matching PyTorch semantics (no padding/bias).

    mxu_dtype: operand dtype fed to the pointwise matmul (accumulation is
    always f32).  bf16 keeps the v6e/v7x MXU in its native mode; use
    jnp.float32 for bit-accurate f32 (and on v5e, whose VPU has no bf16)."""
    N, Cin, H, W = x_nchw.shape
    KH, KW = int(w_dw.shape[2]), int(w_dw.shape[3])
    Cout = int(w_pw.shape[0])
    OH = (H - KH) // stride + 1
    OW = (W - KW) // stride + 1

    cip = _round_up(Cin, _LANE)
    cop = _round_up(Cout, _LANE)

    # NCHW -> NHWC (channels on lanes) + zero-pad channels to lane width so
    # all loads / stores / MXU tiles are lane-dense.
    # (End-to-end NHWC I/O would avoid the two full-tensor HBM transposes;
    #  kept here to preserve the PyTorch NCHW interface.)
    # TODO(synk): for genuinely tiny channel counts a W-on-lanes layout would
    # avoid inflating HBM input traffic by cip/Cin; not implemented here.
    x = jnp.transpose(x_nchw, (0, 2, 3, 1))                   # (N, H, W, Cin)
    if cip != Cin:
        x = jnp.pad(x, ((0, 0), (0, 0), (0, 0), (0, cip - Cin)))
    wd = jnp.transpose(w_dw[:, 0, :, :], (1, 2, 0))           # (KH, KW, Cin)
    wd = jnp.pad(wd, ((0, 0), (0, 0), (0, cip - Cin)))
    wp = jnp.transpose(w_pw[:, :, 0, 0], (1, 0))              # (Cin, Cout)
    wp = jnp.pad(wp, ((0, cip - Cin), (0, cop - Cout)))

    in_itemsize = x.dtype.itemsize
    if row_tile is None:
        row_tile = _pick_row_tile(OH, OW, W, KH, stride, cip, cop,
                                  in_itemsize, in_itemsize)
    assert OH % row_tile == 0, (OH, row_tile)
    th = row_tile
    ih = (th - 1) * stride + KH
    n_th = OH // th

    est = (2 * ih * W * cip * in_itemsize
           + 2 * th * OW * cop * in_itemsize
           + th * OW * cip * 4
           + 2 * (KH * KW * cip + cip * cop) * 4)
    vmem_limit = int(min(64 * 1024 * 1024, max(16 * 1024 * 1024, 4 * est)))

    kernel = functools.partial(_ds_conv_kernel, stride=stride, th=th,
                               mxu_dtype=mxu_dtype)

    out = pl.pallas_call(
        kernel,
        out_shape=jax.ShapeDtypeStruct((N, OH, OW, cop), x.dtype),
        grid_spec=pltpu.PrefetchScalarGridSpec(
            num_scalar_prefetch=0,
            grid=(N, n_th),
            in_specs=[
                pl.BlockSpec(memory_space=pl.ANY),                 # x stays in HBM
                pl.BlockSpec((KH, KW, cip), lambda n, i: (0, 0, 0)),
                pl.BlockSpec((cip, cop), lambda n, i: (0, 0)),
            ],
            out_specs=pl.BlockSpec((1, th, OW, cop),
                                   lambda n, i: (n, i, 0, 0)),
            scratch_shapes=[
                pltpu.VMEM((2, ih, W, cip), x.dtype),
                pltpu.SemaphoreType.DMA((2,)),
            ],
        ),
        compiler_params=pltpu.CompilerParams(
            # Batch axis parallel (megacore); the row axis must stay
            # sequential because the manual DMA prefetches tile i+1 while
            # computing tile i.
            dimension_semantics=("parallel", "arbitrary"),
            vmem_limit_bytes=vmem_limit),
    )(x, wd, wp)

    out = out[..., :Cout]                     # drop lane padding
    return jnp.transpose(out, (0, 3, 1, 2))   # back to NCHW


def _reference(x_nchw, w_dw, w_pw, *, stride):
    """Pure-JAX reference using lax.conv (NCHW, same as PyTorch)."""
    Cin = x_nchw.shape[1]
    dw = lax.conv_general_dilated(
        x_nchw, w_dw, window_strides=(stride, stride), padding="VALID",
        dimension_numbers=("NCHW", "OIHW", "NCHW"), feature_group_count=Cin)
    pw = lax.conv_general_dilated(
        dw, w_pw, window_strides=(1, 1), padding="VALID",
        dimension_numbers=("NCHW", "OIHW", "NCHW"))
    return pw


if __name__ == "__main__":
    N, Cin, Cout = 2, 4, 8
    H = W = 16
    K = 3

    key = jax.random.PRNGKey(0)
    kx, kd, kp = jax.random.split(key, 3)
    x = jax.random.normal(kx, (N, Cin, H, W), dtype=jnp.float32)
    w_dw = jax.random.normal(kd, (Cin, 1, K, K), dtype=jnp.float32) * 0.1
    w_pw = jax.random.normal(kp, (Cout, Cin, 1, 1), dtype=jnp.float32) * 0.1

    # ---- stride 1: auto row tiling (2 row tiles -> halo + prefetch path) ----
    ref1 = _reference(x, w_dw, w_pw, stride=1)

    out_f32 = depthwise_separable_conv(x, w_dw, w_pw, stride=1,
                                       mxu_dtype=jnp.float32)
    out_f32 = jax.block_until_ready(out_f32)
    assert out_f32.shape == ref1.shape, (out_f32.shape, ref1.shape)
    assert jnp.allclose(out_f32, ref1, atol=1e-4, rtol=1e-4), "f32 mismatch"

    out_bf16 = depthwise_separable_conv(x, w_dw, w_pw, stride=1)  # bf16 MXU feed
    out_bf16 = jax.block_until_ready(out_bf16)
    assert jnp.allclose(out_bf16, ref1, atol=2e-2, rtol=2e-2), "bf16 mismatch"

    # ---- stride 2, forced 1-row tiles: strided-window + multi-tile path ----
    ref2 = _reference(x, w_dw, w_pw, stride=2)
    out_s2 = depthwise_separable_conv(x, w_dw, w_pw, stride=2, row_tile=1,
                                      mxu_dtype=jnp.float32)
    out_s2 = jax.block_until_ready(out_s2)
    assert out_s2.shape == ref2.shape, (out_s2.shape, ref2.shape)
    assert jnp.allclose(out_s2, ref2, atol=1e-4, rtol=1e-4), "stride-2 mismatch"

    print("KERNEL_OK")
</pallas_src>

<mosaic_0001>
module attributes {stable_mosaic.version = 11 : i64} {
  func.func @_ds_conv_kernel(%arg0: i32, %arg1: i32, %arg2: memref<2x16x16x128xf32, #tpu.memory_space<any>>, %arg3: memref<3x3x128xf32, #tpu.memory_space<vmem>>, %arg4: memref<128x128xf32, #tpu.memory_space<vmem>>, %arg5: memref<1x7x14x128xf32, #tpu.memory_space<vmem>>, %arg6: memref<2x9x16x128xf32, #tpu.memory_space<vmem>>, %arg7: memref<2x!tpu.dma_semaphore, #tpu.memory_space<semaphore_mem>>) attributes {dimension_semantics = [#tpu.dimension_semantics<parallel>, #tpu.dimension_semantics<arbitrary>], iteration_bounds = array<i64: 2, 2>, scalar_prefetch = 0 : i64, scratch_operands = 2 : i64, tpu.core_type = #tpu.core_type<tc>, window_params = [{}, {pipeline_mode = #tpu.pipeline_mode<synchronous>, transform_indices = @transform_1, window_bounds = array<i64: 3, 3, 128>}, {pipeline_mode = #tpu.pipeline_mode<synchronous>, transform_indices = @transform_2, window_bounds = array<i64: 128, 128>}, {transform_indices = @transform_3, window_bounds = array<i64: 1, 7, 14, 128>}]} {
    %c2_i32 = arith.constant 2 : i32
    %c0_i32 = arith.constant 0 : i32
    %0 = arith.cmpi eq, %c2_i32, %c0_i32 : i32
    %c1_i32 = arith.constant 1 : i32
    %1 = arith.select %0, %c1_i32, %c2_i32 : i32
    %2 = arith.remsi %arg1, %1 : i32
    %c0_i32_0 = arith.constant 0 : i32
    %3 = arith.cmpi ne, %2, %c0_i32_0 : i32
    %c0_i32_1 = arith.constant 0 : i32
    %4 = arith.cmpi slt, %2, %c0_i32_1 : i32
    %c0_i32_2 = arith.constant 0 : i32
    %5 = arith.cmpi slt, %1, %c0_i32_2 : i32
    %6 = arith.xori %4, %5 : i1
    %7 = arith.andi %6, %3 : i1
    %8 = arith.addi %2, %1 : i32
    %9 = arith.select %7, %8, %2 : i32
    %c0_i32_3 = arith.constant 0 : i32
    %10 = arith.cmpi eq, %arg1, %c0_i32_3 : i32
    %11 = arith.extui %10 : i1 to i32
    %c0_i32_4 = arith.constant 0 : i32
    %12 = arith.cmpi ne, %11, %c0_i32_4 : i32
    scf.if %12 {
      %c0_i32_29 = arith.constant 0 : i32
      %c0_i32_30 = arith.constant 0 : i32
      %c0_i32_31 = arith.constant 0 : i32
      %c0_i32_32 = arith.constant 0 : i32
      %c0_i32_33 = arith.constant 0 : i32
      %103 = tpu.memref_slice %arg2[%arg0, %c0_i32_31, %c0_i32_32, %c0_i32_33] : memref<2x16x16x128xf32, #tpu.memory_space<any>> -> memref<1x9x16x128xf32, #tpu.memory_space<any>>
      %104 = tpu.memref_squeeze %103 : memref<1x9x16x128xf32, #tpu.memory_space<any>> -> memref<9x16x128xf32, #tpu.memory_space<any>>
      %c0_i32_34 = arith.constant 0 : i32
      %c0_i32_35 = arith.constant 0 : i32
      %c0_i32_36 = arith.constant 0 : i32
      %105 = tpu.memref_slice %arg6[%c0_i32_29, %c0_i32_34, %c0_i32_35, %c0_i32_36] : memref<2x9x16x128xf32, #tpu.memory_space<vmem>> -> memref<1x9x16x128xf32, #tpu.memory_space<vmem>>
      %106 = tpu.memref_squeeze %105 : memref<1x9x16x128xf32, #tpu.memory_space<vmem>> -> memref<9x16x128xf32, #tpu.memory_space<vmem>>
      %107 = tpu.memref_slice %arg7[%c0_i32_30] : memref<2x!tpu.dma_semaphore, #tpu.memory_space<semaphore_mem>> -> memref<1x!tpu.dma_semaphore, #tpu.memory_space<semaphore_mem>>
      %108 = tpu.memref_squeeze %107 : memref<1x!tpu.dma_semaphore, #tpu.memory_space<semaphore_mem>> -> memref<!tpu.dma_semaphore, #tpu.memory_space<semaphore_mem>>
      tpu.enqueue_dma source(%104 : memref<9x16x128xf32, #tpu.memory_space<any>>) target(%106 : memref<9x16x128xf32, #tpu.memory_space<vmem>>) target_semaphore(%108 : memref<!tpu.dma_semaphore, #tpu.memory_space<semaphore_mem>>)
    } else {
    }
    %c7_i32 = arith.constant 7 : i32
    %13 = arith.muli %arg1, %c7_i32 : i32
    %c0_i32_5 = arith.constant 0 : i32
    %c0_i32_6 = arith.constant 0 : i32
    %14 = tpu.memref_slice %arg2[%arg0, %13, %c0_i32_5, %c0_i32_6] : memref<2x16x16x128xf32, #tpu.memory_space<any>> -> memref<1x9x16x128xf32, #tpu.memory_space<any>>
    %15 = tpu.memref_squeeze %14 : memref<1x9x16x128xf32, #tpu.memory_space<any>> -> memref<9x16x128xf32, #tpu.memory_space<any>>
    %c0_i32_7 = arith.constant 0 : i32
    %c0_i32_8 = arith.constant 0 : i32
    %c0_i32_9 = arith.constant 0 : i32
    %16 = tpu.memref_slice %arg6[%9, %c0_i32_7, %c0_i32_8, %c0_i32_9] : memref<2x9x16x128xf32, #tpu.memory_space<vmem>> -> memref<1x9x16x128xf32, #tpu.memory_space<vmem>>
    %17 = tpu.memref_squeeze %16 : memref<1x9x16x128xf32, #tpu.memory_space<vmem>> -> memref<9x16x128xf32, #tpu.memory_space<vmem>>
    %18 = tpu.memref_slice %arg7[%9] : memref<2x!tpu.dma_semaphore, #tpu.memory_space<semaphore_mem>> -> memref<1x!tpu.dma_semaphore, #tpu.memory_space<semaphore_mem>>
    %19 = tpu.memref_squeeze %18 : memref<1x!tpu.dma_semaphore, #tpu.memory_space<semaphore_mem>> -> memref<!tpu.dma_semaphore, #tpu.memory_space<semaphore_mem>>
    tpu.wait_dma2 semaphore(%19 : memref<!tpu.dma_semaphore, #tpu.memory_space<semaphore_mem>>) src(%15 : memref<9x16x128xf32, #tpu.memory_space<any>>) dst(%17 : memref<9x16x128xf32, #tpu.memory_space<vmem>>)
    %c1_i32_10 = arith.constant 1 : i32
    %20 = arith.addi %arg1, %c1_i32_10 : i32
    %c2_i32_11 = arith.constant 2 : i32
    %21 = arith.cmpi slt, %20, %c2_i32_11 : i32
    %22 = arith.extui %21 : i1 to i32
    %c0_i32_12 = arith.constant 0 : i32
    %23 = arith.cmpi ne, %22, %c0_i32_12 : i32
    scf.if %23 {
      %c1_i32_29 = arith.constant 1 : i32
      %103 = arith.addi %arg1, %c1_i32_29 : i32
      %c1_i32_30 = arith.constant 1 : i32
      %104 = arith.subi %c1_i32_30, %9 : i32
      %c7_i32_31 = arith.constant 7 : i32
      %105 = arith.muli %103, %c7_i32_31 : i32
      %c0_i32_32 = arith.constant 0 : i32
      %c0_i32_33 = arith.constant 0 : i32
      %106 = tpu.memref_slice %arg2[%arg0, %105, %c0_i32_32, %c0_i32_33] : memref<2x16x16x128xf32, #tpu.memory_space<any>> -> memref<1x9x16x128xf32, #tpu.memory_space<any>>
      %107 = tpu.memref_squeeze %106 : memref<1x9x16x128xf32, #tpu.memory_space<any>> -> memref<9x16x128xf32, #tpu.memory_space<any>>
      %c0_i32_34 = arith.constant 0 : i32
      %c0_i32_35 = arith.constant 0 : i32
      %c0_i32_36 = arith.constant 0 : i32
      %108 = tpu.memref_slice %arg6[%104, %c0_i32_34, %c0_i32_35, %c0_i32_36] : memref<2x9x16x128xf32, #tpu.memory_space<vmem>> -> memref<1x9x16x128xf32, #tpu.memory_space<vmem>>
      %109 = tpu.memref_squeeze %108 : memref<1x9x16x128xf32, #tpu.memory_space<vmem>> -> memref<9x16x128xf32, #tpu.memory_space<vmem>>
      %110 = tpu.memref_slice %arg7[%104] : memref<2x!tpu.dma_semaphore, #tpu.memory_space<semaphore_mem>> -> memref<1x!tpu.dma_semaphore, #tpu.memory_space<semaphore_mem>>
      %111 = tpu.memref_squeeze %110 : memref<1x!tpu.dma_semaphore, #tpu.memory_space<semaphore_mem>> -> memref<!tpu.dma_semaphore, #tpu.memory_space<semaphore_mem>>
      tpu.enqueue_dma source(%107 : memref<9x16x128xf32, #tpu.memory_space<any>>) target(%109 : memref<9x16x128xf32, #tpu.memory_space<vmem>>) target_semaphore(%111 : memref<!tpu.dma_semaphore, #tpu.memory_space<semaphore_mem>>)
    } else {
    }
    %c0 = arith.constant 0 : index
    %c0_13 = arith.constant 0 : index
    %c0_14 = arith.constant 0 : index
    %24 = vector.load %arg3[%c0, %c0_13, %c0_14] : memref<3x3x128xf32, #tpu.memory_space<vmem>>, vector<3x3x128xf32>
    %cst = arith.constant 0.000000e+00 : f32
    %25 = vector.broadcast %cst : f32 to vector<7x14x128xf32>
    %26 = arith.index_cast %9 : i32 to index
    %c0_15 = arith.constant 0 : index
    %c0_16 = arith.constant 0 : index
    %c0_17 = arith.constant 0 : index
    %27 = vector.load %arg6[%26, %c0_15, %c0_16, %c0_17] : memref<2x9x16x128xf32, #tpu.memory_space<vmem>>, vector<1x7x16x128xf32>
    %28 = vector.shape_cast %27 : vector<1x7x16x128xf32> to vector<7x16x128xf32>
    %29 = vector.extract_strided_slice %28 {offsets = [0, 0, 0], sizes = [7, 14, 128], strides = [1, 1, 1]} : vector<7x16x128xf32> to vector<7x14x128xf32>
    %30 = vector.extract_strided_slice %24 {offsets = [0, 0, 0], sizes = [1, 1, 128], strides = [1, 1, 1]} : vector<3x3x128xf32> to vector<1x1x128xf32>
    %31 = vector.shape_cast %30 : vector<1x1x128xf32> to vector<128xf32>
    %32 = vector.shape_cast %31 : vector<128xf32> to vector<1x1x128xf32>
    %33 = vector.broadcast %32 : vector<1x1x128xf32> to vector<7x14x128xf32>
    %34 = arith.mulf %29, %33 : vector<7x14x128xf32>
    %35 = arith.addf %25, %34 : vector<7x14x128xf32>
    %36 = vector.extract_strided_slice %28 {offsets = [0, 1, 0], sizes = [7, 14, 128], strides = [1, 1, 1]} : vector<7x16x128xf32> to vector<7x14x128xf32>
    %37 = vector.extract_strided_slice %24 {offsets = [0, 1, 0], sizes = [1, 1, 128], strides = [1, 1, 1]} : vector<3x3x128xf32> to vector<1x1x128xf32>
    %38 = vector.shape_cast %37 : vector<1x1x128xf32> to vector<128xf32>
    %39 = vector.shape_cast %38 : vector<128xf32> to vector<1x1x128xf32>
    %40 = vector.broadcast %39 : vector<1x1x128xf32> to vector<7x14x128xf32>
    %41 = arith.mulf %36, %40 : vector<7x14x128xf32>
    %42 = arith.addf %35, %41 : vector<7x14x128xf32>
    %43 = vector.extract_strided_slice %28 {offsets = [0, 2, 0], sizes = [7, 14, 128], strides = [1, 1, 1]} : vector<7x16x128xf32> to vector<7x14x128xf32>
    %44 = vector.extract_strided_slice %24 {offsets = [0, 2, 0], sizes = [1, 1, 128], strides = [1, 1, 1]} : vector<3x3x128xf32> to vector<1x1x128xf32>
    %45 = vector.shape_cast %44 : vector<1x1x128xf32> to vector<128xf32>
    %46 = vector.shape_cast %45 : vector<128xf32> to vector<1x1x128xf32>
    %47 = vector.broadcast %46 : vector<1x1x128xf32> to vector<7x14x128xf32>
    %48 = arith.mulf %43, %47 : vector<7x14x128xf32>
    %49 = arith.addf %42, %48 : vector<7x14x128xf32>
    %50 = arith.index_cast %9 : i32 to index
    %c1 = arith.constant 1 : index
    %c0_18 = arith.constant 0 : index
    %c0_19 = arith.constant 0 : index
    %51 = vector.load %arg6[%50, %c1, %c0_18, %c0_19] : memref<2x9x16x128xf32, #tpu.memory_space<vmem>>, vector<1x7x16x128xf32>
    %52 = vector.shape_cast %51 : vector<1x7x16x128xf32> to vector<7x16x128xf32>
    %53 = vector.extract_strided_slice %52 {offsets = [0, 0, 0], sizes = [7, 14, 128], strides = [1, 1, 1]} : vector<7x16x128xf32> to vector<7x14x128xf32>
    %54 = vector.extract_strided_slice %24 {offsets = [1, 0, 0], sizes = [1, 1, 128], strides = [1, 1, 1]} : vector<3x3x128xf32> to vector<1x1x128xf32>
    %55 = vector.shape_cast %54 : vector<1x1x128xf32> to vector<128xf32>
    %56 = vector.shape_cast %55 : vector<128xf32> to vector<1x1x128xf32>
    %57 = vector.broadcast %56 : vector<1x1x128xf32> to vector<7x14x128xf32>
    %58 = arith.mulf %53, %57 : vector<7x14x128xf32>
    %59 = arith.addf %49, %58 : vector<7x14x128xf32>
    %60 = vector.extract_strided_slice %52 {offsets = [0, 1, 0], sizes = [7, 14, 128], strides = [1, 1, 1]} : vector<7x16x128xf32> to vector<7x14x128xf32>
    %61 = vector.extract_strided_slice %24 {offsets = [1, 1, 0], sizes = [1, 1, 128], strides = [1, 1, 1]} : vector<3x3x128xf32> to vector<1x1x128xf32>
    %62 = vector.shape_cast %61 : vector<1x1x128xf32> to vector<128xf32>
    %63 = vector.shape_cast %62 : vector<128xf32> to vector<1x1x128xf32>
    %64 = vector.broadcast %63 : vector<1x1x128xf32> to vector<7x14x128xf32>
    %65 = arith.mulf %60, %64 : vector<7x14x128xf32>
    %66 = arith.addf %59, %65 : vector<7x14x128xf32>
    %67 = vector.extract_strided_slice %52 {offsets = [0, 2, 0], sizes = [7, 14, 128], strides = [1, 1, 1]} : vector<7x16x128xf32> to vector<7x14x128xf32>
    %68 = vector.extract_strided_slice %24 {offsets = [1, 2, 0], sizes = [1, 1, 128], strides = [1, 1, 1]} : vector<3x3x128xf32> to vector<1x1x128xf32>
    %69 = vector.shape_cast %68 : vector<1x1x128xf32> to vector<128xf32>
    %70 = vector.shape_cast %69 : vector<128xf32> to vector<1x1x128xf32>
    %71 = vector.broadcast %70 : vector<1x1x128xf32> to vector<7x14x128xf32>
    %72 = arith.mulf %67, %71 : vector<7x14x128xf32>
    %73 = arith.addf %66, %72 : vector<7x14x128xf32>
    %74 = arith.index_cast %9 : i32 to index
    %c2 = arith.constant 2 : index
    %c0_20 = arith.constant 0 : index
    %c0_21 = arith.constant 0 : index
    %75 = vector.load %arg6[%74, %c2, %c0_20, %c0_21] : memref<2x9x16x128xf32, #tpu.memory_space<vmem>>, vector<1x7x16x128xf32>
    %76 = vector.shape_cast %75 : vector<1x7x16x128xf32> to vector<7x16x128xf32>
    %77 = vector.extract_strided_slice %76 {offsets = [0, 0, 0], sizes = [7, 14, 128], strides = [1, 1, 1]} : vector<7x16x128xf32> to vector<7x14x128xf32>
    %78 = vector.extract_strided_slice %24 {offsets = [2, 0, 0], sizes = [1, 1, 128], strides = [1, 1, 1]} : vector<3x3x128xf32> to vector<1x1x128xf32>
    %79 = vector.shape_cast %78 : vector<1x1x128xf32> to vector<128xf32>
    %80 = vector.shape_cast %79 : vector<128xf32> to vector<1x1x128xf32>
    %81 = vector.broadcast %80 : vector<1x1x128xf32> to vector<7x14x128xf32>
    %82 = arith.mulf %77, %81 : vector<7x14x128xf32>
    %83 = arith.addf %73, %82 : vector<7x14x128xf32>
    %84 = vector.extract_strided_slice %76 {offsets = [0, 1, 0], sizes = [7, 14, 128], strides = [1, 1, 1]} : vector<7x16x128xf32> to vector<7x14x128xf32>
    %85 = vector.extract_strided_slice %24 {offsets = [2, 1, 0], sizes = [1, 1, 128], strides = [1, 1, 1]} : vector<3x3x128xf32> to vector<1x1x128xf32>
    %86 = vector.shape_cast %85 : vector<1x1x128xf32> to vector<128xf32>
    %87 = vector.shape_cast %86 : vector<128xf32> to vector<1x1x128xf32>
    %88 = vector.broadcast %87 : vector<1x1x128xf32> to vector<7x14x128xf32>
    %89 = arith.mulf %84, %88 : vector<7x14x128xf32>
    %90 = arith.addf %83, %89 : vector<7x14x128xf32>
    %91 = vector.extract_strided_slice %76 {offsets = [0, 2, 0], sizes = [7, 14, 128], strides = [1, 1, 1]} : vector<7x16x128xf32> to vector<7x14x128xf32>
    %92 = vector.extract_strided_slice %24 {offsets = [2, 2, 0], sizes = [1, 1, 128], strides = [1, 1, 1]} : vector<3x3x128xf32> to vector<1x1x128xf32>
    %93 = vector.shape_cast %92 : vector<1x1x128xf32> to vector<128xf32>
    %94 = vector.shape_cast %93 : vector<128xf32> to vector<1x1x128xf32>
    %95 = vector.broadcast %94 : vector<1x1x128xf32> to vector<7x14x128xf32>
    %96 = arith.mulf %91, %95 : vector<7x14x128xf32>
    %97 = arith.addf %90, %96 : vector<7x14x128xf32>
    %c0_22 = arith.constant 0 : index
    %c0_23 = arith.constant 0 : index
    %98 = vector.load %arg4[%c0_22, %c0_23] : memref<128x128xf32, #tpu.memory_space<vmem>>, vector<128x128xf32>
    %cst_24 = arith.constant dense<0.000000e+00> : vector<7x14x128xf32>
    %99 = tpu.matmul %97, %98, %cst_24 {dimension_numbers = #tpu.dot_dimension_numbers<[2], [0], [0, 1], [1], [0, 0, 0, 1, 1, 1], [], []>} : vector<7x14x128xf32>, vector<128x128xf32>, vector<7x14x128xf32> -> vector<7x14x128xf32>
    %c0_25 = arith.constant 0 : index
    %c0_26 = arith.constant 0 : index
    %c0_27 = arith.constant 0 : index
    %c0_28 = arith.constant 0 : index
    %100 = vector.load %arg5[%c0_25, %c0_26, %c0_27, %c0_28] : memref<1x7x14x128xf32, #tpu.memory_space<vmem>>, vector<1x7x14x128xf32>
    %101 = vector.shape_cast %100 : vector<1x7x14x128xf32> to vector<7x14x128xf32>
    %102 = vector.shape_cast %99 : vector<7x14x128xf32> to vector<1x7x14x128xf32>
    tpu.vector_store %arg5[%c0_25, %c0_26, %c0_27, %c0_28], %102 {strides = array<i32>} : memref<1x7x14x128xf32, #tpu.memory_space<vmem>>, vector<1x7x14x128xf32>,
    return
  }
  func.func @transform_1(%arg0: i32, %arg1: i32) -> (i32, i32, i32) {
    %c0_i32 = arith.constant 0 : i32
    %c0_i32_0 = arith.constant 0 : i32
    %c0_i32_1 = arith.constant 0 : i32
    %c0_i32_2 = arith.constant 0 : i32
    return %c0_i32, %c0_i32_0, %c0_i32_1 : i32, i32, i32
  }
  func.func @transform_2(%arg0: i32, %arg1: i32) -> (i32, i32) {
    %c0_i32 = arith.constant 0 : i32
    %c0_i32_0 = arith.constant 0 : i32
    %c0_i32_1 = arith.constant 0 : i32
    return %c0_i32, %c0_i32_0 : i32, i32
  }
  func.func @transform_3(%arg0: i32, %arg1: i32) -> (i32, i32, i32, i32) {
    %c0_i32 = arith.constant 0 : i32
    %c0_i32_0 = arith.constant 0 : i32
    %c0_i32_1 = arith.constant 0 : i32
    return %arg0, %arg1, %c0_i32, %c0_i32_0 : i32, i32, i32, i32
  }
}

</mosaic_0001>

<bundles_post_ra>
// kernel: tpu_custom_call.1
= control target key start
LH: loop header
LB: loop body
LE: loop exit
PB: predicated region body
PF: predicated region fallthrough
CT: control target
= control target key end

     0   :  { %8 = vsyncpa [#allocation5], 0  ;;  %s3600_s0 = inlined_call_operand.hbm [shape: f32[2,16,16,128], index: 0, kind: input, shape index: {}]   ;;  %s3601_s1 = inlined_call_operand.hbm [shape: f32[3,3,128], index: 1, kind: input, shape index: {}]   ;;  %s3602_s2 = inlined_call_operand.hbm [shape: f32[128,128], index: 2, kind: input, shape index: {}]   ;;  %s3603_s3 = inlined_call_operand.vmem [shape: f32[2,14,14,128], index: 3, kind: output, shape index: {}]  }
   0x1   :  { %9 = vsyncpa [#allocation7], 0  ;;  %s2570_s12 = smov 0   ;;  %s2572_s13 = smov 0  }
   0x2   :  { %s2574_s14 = smov 0   ;;  %s2576_s15 = smov 0  }
   0x3   :  { %s2578_s16 = smov 0  }
   0x4 LB: > { %s2107_s17 = sadd.s32 4294967295, %s2537_s16   ;;  %s24_s18 = sadd.s32 1, %s2529_s14  ;;  %s2537_s16 = sphi %s2578_s16, %s15_s16   ;;  %s2533_s15 = sphi %s2576_s15, %s3628_s15   ;;  %s2529_s14 = sphi %s2574_s14, %s3627_s14   ;;  %s2525_s13 = sphi %s2572_s13, %s3626_s13   ;;  %s2521_s12 = sphi %s2570_s12, %s3625_s12  }
   0x5   : > { %p25_p0 = scmp.ge.s32.totalorder %s24_s18, 2  ;;  %s27_s19 = sadd.s32 1, %s2533_s15 }
   0x6   : > { %p2109_p1 = scmp.ge.s32.totalorder %s2537_s16, 1  ;;  %p102_p2 = scmp.lt.s32.totalorder %s2537_s16, 5 }
   0x7   : > { %s3630_s18 = smov (%p25_p0, %s24_s18), 0  ;;  %s3632_s19 = smov (!%p25_p0, %s27_s19), %s2533_s15 }
   0x8   : > { %p2603_p3 = pnand %p2109_p1, %p102_p2  ;;  %p29_p4 = scmp.ge.s32.totalorder %s3632_s19, 2 }
   0x9   : > { %p2607_p5 = scmp.eq.s32.totalorder %s2107_s17, 0  ;;  %s2539_s22 = smov [#allocation4]  }
   0xa   : > { %s3613_s20 = scalar_select %p2603_p3, 1, 0 }
   0xb   : > { %s3614_s21 = scalar_select %p2607_p5, 1, 0 }
   0xc   : > { %p2312_p6 = pneg %p2603_p3  ;;  %s3634_s19 = smov (%p29_p4, %s3632_s19), 0 }
   0xd   : > { %s114_s23 = sshll.u32 %s2539_s22, 4  ;;  %s2376_s27 = scalar_lea.hbm %s3601_s1, 192  ;;  %s115_s23 = int_to_ptr.vmem [resolvable:$true] %s114_s23 }
   0xe   : > { %p2617_p7 = pnand %p2607_p5, %p2312_p6  ;;  %p2377_p8 = scmp.ne.s32.totalorder %s3601_s1, %s2376_s27 }
   0xf   : > { %p2383_p12 = scmp.lt.u32.totalorder %s2376_s27, %s3601_s1 }
  0x10   : > { %p2378_p9 = pneg %p2617_p7 }
  0x12   : > { %p2379_p10 = pnand %p2378_p9, %p2377_p8 }
  0x14   : > { %p2380_p11 = pneg %p2379_p10 }
  0x16   : > { %p2385_p13 = pnand %p2383_p12, %p2380_p11 }
  0x18   : > { %2388 = shalt.err (!%p2385_p13)
}
  0x19   : > { %s2389_s5 = scalar_lea.vmem %s115_s23, 192  ;;  %p2397_p4 = scmp.lt.s32.totalorder %s115_s23, %s115_s23 }
  0x1a   : > { %p2390_p0 = scmp.ne.s32.totalorder %s115_s23, %s2389_s5  ;;  %p2398_p6 = scmp.lt.s32.totalorder %s2389_s5, %s2389_s5 }
  0x1c   : > { %p2392_p1 = pnand %p2390_p0, %p2378_p9  ;;  %p2399_p5 = por %p2398_p6, %p2397_p4 }
  0x1e   : > { %p2393_p2 = pneg %p2392_p1 }
  0x20   : > { %p2400_p3 = pnand %p2399_p5, %p2393_p2 }
  0x22   : > { %2403 = shalt.err (!%p2400_p3)
}
  0x23   : > { %s2540_s6 = smov 64   ;;  %s2541_s7 = smov 4  }
  0x24   : > { %2315 = dma.hbm_to_vmem [thread:$0]  (!%p2617_p7), %s3601_s1, 192, %s115_s23, [#allocation5], %s2540_s6, %s2540_s6, %s2541_s7  }
  0x25   : > { %s2542_s10 = smov [#allocation6]   ;;  %s2404_s25 = scalar_lea.hbm %s3602_s2, 2048 }
  0x26   : > { %s127_s11 = sshll.u32 %s2542_s10, 4  ;;  %p2405_p3 = scmp.ne.s32.totalorder %s3602_s2, %s2404_s25  ;;  %s128_s11 = int_to_ptr.vmem [resolvable:$true] %s127_s11 }
  0x27   : > { %p2411_p10 = scmp.lt.u32.totalorder %s2404_s25, %s3602_s2 }
  0x28   : > { %p2407_p5 = pnand %p2405_p3, %p2378_p9 }
  0x2a   : > { %p2408_p8 = pneg %p2407_p5 }
  0x2c   : > { %p2413_p11 = pnand %p2411_p10, %p2408_p8 }
  0x2e   : > { %2416 = shalt.err (!%p2413_p11)
}
  0x2f   : > { %s2417_s23 = scalar_lea.vmem %s128_s11, 2048  ;;  %p2425_p1 = scmp.lt.s32.totalorder %s128_s11, %s128_s11 }
  0x30   : > { %p2418_p12 = scmp.ne.s32.totalorder %s128_s11, %s2417_s23  ;;  %p2426_p2 = scmp.lt.s32.totalorder %s2417_s23, %s2417_s23 }
  0x32   : > { %p2420_p13 = pnand %p2418_p12, %p2378_p9  ;;  %p2427_p4 = por %p2426_p2, %p2425_p1 }
  0x34   : > { %p2421_p0 = pneg %p2420_p13 }
  0x36   : > { %p2428_p6 = pnand %p2427_p4, %p2421_p0 }
  0x38   : > { %2431 = shalt.err (!%p2428_p6)
}
  0x39   : > { %s2543_s30 = smov 128   ;;  %s2544_s4 = smov 8  }
  0x3a   : > { %2318 = dma.hbm_to_vmem [thread:$0]  (!%p2617_p7), %s3602_s2, 2048, %s128_s11, [#allocation7], %s2543_s30, %s2543_s30, %s2544_s4  }
  0x3b   : > { %p3616_p3 = scmp.ne.s32.totalorder %s3613_s20, 0 }
  0x3c   : > { %p3617_p5 = scmp.ne.s32.totalorder (!%p3616_p3), %s3614_s21, 0 }
  0x3d   : > { %143 = sbr.rel (%p3616_p3) target bundleno = 505 (0x1f9), region = 28 }
  0x44   : > { %2510 = dma.done.wait (%p3617_p5), [#allocation5], 192  }
  0x45   : > { %2512 = vsyncadd (%p3617_p5), [#allocation5], 4294967104 }
  0x46   : > { %2514 = dma.done.wait (%p3617_p5), [#allocation7], 2048  }
  0x47   : > { %2516 = vsyncadd (%p3617_p5), [#allocation7], 4294965248  ;;  %s169_s20 = smul.u32 7, %s2521_s12  ;;  %p170_p7 = scmp.lt.s32.totalorder %s2525_s13, 1 }
  0x48   : > { %s181_s24 = ssub.s32 0, %s2521_s12  ;;  %p180_p8 = scmp.lt.s32.totalorder %s2521_s12, 0 }
  0x49   : > { %s171_s7 = scalar_select %p170_p7, %s2525_s13, 1 }
  0x4a   : > { %p172_p9 = scmp.lt.s32.totalorder %s169_s20, 13  ;;  %s2117_s8 = smin.u32 %s2521_s12, %s181_s24 }
  0x4b   : > { %s2299_s9 = smul.u32 28, %s171_s7  ;;  %s183_s10 = sand.u32 1, %s2117_s8  }
  0x4c   : > { %s3636_s20 = smov (!%p172_p9, %s169_s20), 13  ;;  %s184_s11 = ssub.s32 0, %s183_s10 }
  0x4d   : > { %s2115_s21 = sshll.u32 %s3636_s20, 1  ;;  %p2323_p10 = scmp.eq.s32.totalorder %s2521_s12, 0 }
  0x4e   : > { %s176_s17 = sadd.s32 %s2299_s9, %s2115_s21  ;;  %s2158_s25 = sshll.u32 %s2525_s13, 12 }
  0x4f   : > { %s2116_s22 = sshll.u32 %s176_s17, 3  ;;  %s3638_s11 = smov (!%p180_p8, %s184_s11), %s183_s10 }
  0x50   : > { %s2684_s28 = scalar_lea.vmem %s3603_s3, %s2116_s22  ;;  %s2689_s30 = scalar_lea.hbm %s3600_s0, %s2158_s25 }
  0x51   : > { %s2545_s4 = smov [#allocation2]   ;;  %p2119_p11 = scmp.lt.s32.totalorder %s3638_s11, 0 }
  0x52   : > { %s206_s5 = sshll.u32 %s2545_s4, 4  ;;  %s190_s6 = sadd.s32 2, %s3638_s11  ;;  %s2691_s5 = int_to_ptr.vmem [resolvable:$true] %s206_s5 }
  0x53   : > { %s3640_s6 = smov (!%p2119_p11, %s190_s6), %s3638_s11  ;;  %s2432_s20 = scalar_lea.hbm %s2689_s30, 2304 }
  0x54   : > { %p2433_p12 = scmp.ne.s32.totalorder %s2689_s30, %s2432_s20  ;;  %s2436_s8 = scalar_lea.hbm %s3600_s0, 8192 }
  0x55   : > { %p2437_p1 = scmp.lt.u32.totalorder %s2689_s30, %s3600_s0  ;;  %p2438_p2 = scmp.lt.u32.totalorder %s2436_s8, %s2432_s20 }
  0x56   : > { %p2434_p13 = pnand %p2433_p12, %p2323_p10  ;;  %p2440_p6 = scmp.lt.u32.totalorder %s2432_s20, %s2689_s30 }
  0x57   : > { %p2439_p4 = por %p2438_p2, %p2437_p1 }
  0x58   : > { %p2435_p0 = pneg %p2434_p13 }
  0x59   : > { %p2441_p3 = por %p2440_p6, %p2439_p4 }
  0x5b   : > { %p2442_p5 = pnand %p2441_p3, %p2435_p0 }
  0x5d   : > { %2445 = shalt.err (!%p2442_p5)  }
  0x5e   : > { %s2446_s11 = scalar_lea.vmem %s2691_s5, 2304  ;;  %s2452_s22 = scalar_lea.vmem %s2691_s5, 4608 }
  0x5f   : > { %p2447_p7 = scmp.ne.s32.totalorder %s2691_s5, %s2446_s11  ;;  %p2453_p11 = scmp.lt.s32.totalorder %s2691_s5, %s2691_s5 }
  0x60   : > { %p2454_p12 = scmp.lt.s32.totalorder %s2452_s22, %s2446_s11 }
  0x61   : > { %p2448_p9 = pnand %p2447_p7, %p2323_p10 }
  0x62   : > { %p2455_p13 = por %p2454_p12, %p2453_p11 }
  0x63   : > { %p2449_p8 = pneg %p2448_p9 }
  0x65   : > { %p2456_p1 = pnand %p2455_p13, %p2449_p8 }
  0x67   : > { %2459 = shalt.err (!%p2456_p1)  }
  0x68   : > { %2309 = dma.hbm_to_vmem [thread:$0]  (%p2323_p10), %s2689_s30, 2304, %s2691_s5, [#allocation3] }
  0x69   : > { %s210_s25 = scalar_lea.sflag [#allocation3], %s3640_s6 }
  0x6a   : > { %2517 = dma.done.wait %s210_s25, 2304 }
  0x6b   : > { %2518 = vsyncadd %s210_s25, 4294964992  ;;  %s215_s26 = sadd.s32 1, %s2521_s12  ;;  %s220_s27 = ssub.s32 1, %s3640_s6  ;;  %v2546_v0 = vmov 0.0|0.0   ;;  %v260_v1 = vlaneseq  ;;  %vm2547_vm0 = vmmov 0   ;;  %v2548_v2 = vmov 0.0  }
  0x6c   : > { %p2727_p0 = scmp.lt.s32.totalorder %s215_s26, 2  ;;  %2259 = vmatprep.subr.bf16.mxu0 %v2546_v0  ;;  %2283 = vmatprep.subr.bf16.mxu1 %v2546_v0  ;;  %s2036_s23 = smul.u32 112, %s2521_s12  ;;  %v2549_v3 = vmov 1983009808   ;;  %v876_v6 = vld [vmem:[#allocation6] sm:$0xff]  ;;  %v877_v7 = vld [vmem:[#allocation6 + $0x8] sm:$0xff] }
  0x6d   : > { %s2124_s30 = sshll.u32 %s2525_s13, 8  ;;  %2220 = vmatprep.mubr.msk.f32.mxu0 %vm2547_vm0, %v2548_v2  ;;  %2241 = vmatprep.mubr.msk.f32.mxu1 %vm2547_vm0, %v2548_v2  ;;  %s227_s4 = smul.u32 144, %s220_s27  ;;  %v908_v4 = vunpack.c.l.s4 %v2549_v3  ;;  %v261_v5 = vshrl.u32 %v260_v1, 7  ;;  %v878_v8 = vld [vmem:[#allocation6 + $0x10] sm:$0xff] }
  0x6e   : > { %s2038_s20 = sadd.s32 %s2124_s30, %s2036_s23  ;;  %s244_s24 = smul.u32 144, %s3640_s6 }
  0x6f   : > { %s2125_s7 = sshll.u32 %s2038_s20, 4  ;;  %s228_s13 = scalar_lea.vmem [#allocation2], %s227_s4  ;;  %v909_v9 = vunpack.c.0.s8 %v908_v4 }
  0x70   : > { %s2040_s12 = scalar_lea.hbm %s3600_s0, %s2125_s7  ;;  %s237_s21 = sshll.u32 %s228_s13, 4  ;;  %s238_s21 = int_to_ptr.vmem [resolvable:$true] %s237_s21 }
  0x71   : > { %s2041_s17 = scalar_lea.hbm %s2040_s12, 1792  ;;  %s229_s11 = scalar_lea.sflag [#allocation3], %s220_s27 }
  0x72   : > { %s2488_s25 = scalar_lea.hbm %s2040_s12, 4096  ;;  %p2465_p6 = scmp.lt.u32.totalorder %s2041_s17, %s3600_s0 }
  0x73   : > { %p2461_p10 = scmp.ne.s32.totalorder %s2041_s17, %s2488_s25  ;;  %p2466_p3 = scmp.lt.u32.totalorder %s2436_s8, %s2488_s25 }
  0x74   : > { %p2468_p7 = scmp.lt.u32.totalorder %s2488_s25, %s2041_s17 }
  0x75   : > { %p2462_p2 = pnand %p2461_p10, %p2727_p0  ;;  %p2467_p5 = por %p2466_p3, %p2465_p6 }
  0x77   : > { %p2463_p4 = pneg %p2462_p2  ;;  %p2469_p9 = por %p2468_p7, %p2467_p5 }
  0x79   : > { %p2470_p8 = pnand %p2469_p9, %p2463_p4 }
  0x7b   : > { %2473 = shalt.err (!%p2470_p8)  }
  0x7c   : > { %s2474_s27 = scalar_lea.vmem %s238_s21, 2304  ;;  %p2481_p1 = scmp.lt.s32.totalorder %s238_s21, %s2691_s5 }
  0x7d   : > { %p2475_p11 = scmp.ne.s32.totalorder %s238_s21, %s2474_s27  ;;  %p2482_p10 = scmp.lt.s32.totalorder %s2452_s22, %s2474_s27 }
  0x7f   : > { %p2476_p12 = pnand %p2475_p11, %p2727_p0  ;;  %p2483_p2 = por %p2482_p10, %p2481_p1 }
  0x81   : > { %p2477_p13 = pneg %p2476_p12 }
  0x83   : > { %p2484_p3 = pnand %p2483_p2, %p2477_p13 }
  0x85   : > { %2487 = shalt.err (!%p2484_p3)  }
  0x86   : > { %2311 = dma.hbm_to_vmem [thread:$0]  (%p2727_p0), %s2041_s17, 2304, %s238_s21, %s229_s11  ;;  %v2260_v10 = vpack.c.bf16 %v877_v7, %v876_v6  ;;  %v879_v11 = vld [vmem:[#allocation6 + $0x18] sm:$0xff]  ;;  %v880_v12 = vld [vmem:[#allocation6 + $0x20] sm:$0xff]  ;;  %v881_v13 = vld [vmem:[#allocation6 + $0x28] sm:$0xff]  ;;  %v262_v17 = vsub.s32 0, %v261_v5  ;;  %v294_v18 = vsub.s32 1, %v261_v5  ;;  %v2761_v28 = vsub.s32 %v909_v9, %v261_v5 }
  0x87   : > { %v882_v14 = vld [vmem:[#allocation6 + $0x30] sm:$0xff]  ;;  %v883_v15 = vld [vmem:[#allocation6 + $0x38] sm:$0xff]  ;;  %v884_v16 = vld [vmem:[#allocation6 + $0x40] sm:$0xff]  ;;  %v376_v19 = vsub.s32 2, %v261_v5  ;;  %v2263_v20 = vpack.c.bf16 %v879_v11, %v878_v8  ;;  %v2266_v24 = vpack.c.bf16 %v881_v13, %v880_v12  ;;  %vm324_vm1 = vcmask 1046528   ;;  %s2787_s5 = scalar_lea.vmem [#allocation2], %s244_s24 }
  0x88   : > { %2261 = vmatpush3.bf16.msra.mxu0 %v2260_v10  ;;  %2291 = vmatpush3.bf16.msra.mxu1 %v2260_v10  ;;  %v885_v21 = vld [vmem:[#allocation6 + $0x48] sm:$0xff]  ;;  %v886_v22 = vld [vmem:[#allocation6 + $0x50] sm:$0xff]  ;;  %v887_v23 = vld [vmem:[#allocation6 + $0x58] sm:$0xff]  ;;  %v2269_v29 = vpack.c.bf16 %v883_v15, %v882_v14  ;;  %vm406_vm2 = vcmask 1045504  }
  0x89   : > { %2262 = vmatprep.subr.bf16.mxu0 %v2546_v0  ;;  %2284 = vmatprep.subr.bf16.mxu1 %v2546_v0  ;;  %v888_v25 = vld [vmem:[#allocation6 + $0x60] sm:$0xff]  ;;  %v889_v26 = vld [vmem:[#allocation6 + $0x68] sm:$0xff]  ;;  %v890_v27 = vld [vmem:[#allocation6 + $0x70] sm:$0xff]  ;;  %v2763_v30 = vpack.c.bf16 %v885_v21, %v884_v16  ;;  %v2765_v31 = vpack.c.bf16 %v887_v23, %v886_v22 }
  0x8a   : > { %v2767_v32 = vpack.c.bf16 %v889_v26, %v888_v25  ;;  %v891_v33 = vld [vmem:[#allocation6 + $0x78] sm:$0xff]  ;;  %v241_v34 = vld [vmem:[#allocation4] sm:$0x7] }
  0x8b   : > { %v242_v35 = vld [vmem:[#allocation4 + $0x4] sm:$0x7]  ;;  %v2769_v36 = vpack.c.bf16 %v891_v33, %v890_v27  ;;  %v243_v37 = vld [vmem:[#allocation4 + $0x8] sm:$0x7]  ;;  %v2771_v38 = vrot.slane %v241_v34, %v262_v17  ;;  %v2773_v39 = vrot.slane %v241_v34, %v294_v18  ;;  %v2775_v40 = vrot.slane %v241_v34, %v376_v19 }
  0x8c   : > { %2264 = vmatpush3.bf16.msra.mxu0 %v2263_v20  ;;  %2292 = vmatpush3.bf16.msra.mxu1 %v2263_v20  ;;  %v2777_v41 = vrot.slane %v242_v35, %v262_v17  ;;  %v2779_v42 = vrot.slane %v242_v35, %v294_v18  ;;  %v2781_v43 = vrot.slane %v242_v35, %v376_v19  ;;  %v246_v44 = vld [vmem:[%s2787_s5] sm:$0xff]  ;;  %v2791_v45 = vld [vmem:[%s2787_s5 + $0x8] sm:$0xff]  ;;  %v2794_v46 = vld [vmem:[%s2787_s5 + $0x10] sm:$0xff] }
  0x8d   : > { %2265 = vmatprep.subr.bf16.mxu0 %v2546_v0  ;;  %2285 = vmatprep.subr.bf16.mxu1 %v2546_v0  ;;  %v2796_v47 = vrot.slane %v243_v37, %v262_v17  ;;  %v2798_v48 = vrot.slane %v243_v37, %v294_v18  ;;  %v2800_v49 = vrot.slane %v243_v37, %v376_v19  ;;  %v2810_v54 = vld [vmem:[%s2787_s5 + $0x18] sm:$0xff]  ;;  %v2825_v59 = vld [vmem:[%s2787_s5 + $0x20] sm:$0xff]  ;;  %v2839_v6 = vld [vmem:[%s2787_s5 + $0x28] sm:$0xff] }
  0x8e   : > { %v264_v50 = vmul.f32 %v2771_v38, %v246_v44  ;;  %v296_v51 = vmul.f32 %v2773_v39, %v246_v44  ;;  %v2806_v52 = vmul.f32 %v2773_v39, %v2791_v45  ;;  %v378_v53 = vmul.f32 %v2775_v40, %v246_v44  ;;  %v2856_v15 = vld [vmem:[%s2787_s5 + $0x40] sm:$0xff]  ;;  %v2869_v20 = vld [vmem:[%s2787_s5 + $0x48] sm:$0xff]  ;;  %v2896_v44 = vld [vmem:[%s2787_s5 + $0x58] sm:$0xff] }
  0x8f   : > { %v2814_v55 = vmul.f32 %v2775_v40, %v2791_v45  ;;  %v476_v56 = vmul.f32 %v2794_v46, %v2777_v41  ;;  %v508_v57 = vmul.f32 %v2794_v46, %v2779_v42  ;;  %v2822_v58 = vmul.f32 %v2810_v54, %v2779_v42 }
  0x90   : > { %2267 = vmatpush3.bf16.msra.mxu0 %v2266_v24  ;;  %2293 = vmatpush3.bf16.msra.mxu1 %v2266_v24  ;;  %v325_v60 = vrot.slane %v296_v51, 1  ;;  %v326_v61 = vrot.slane %v2806_v52, 1  ;;  %v407_v62 = vrot.slane %v378_v53, 2  ;;  %v589_v63 = vmul.f32 %v2794_v46, %v2781_v43  ;;  %v2879_v24 = vld [vmem:[%s2787_s5 + $0x50] sm:$0xff] }
  0x91   : > { %2268 = vmatprep.subr.bf16.mxu0 %v2546_v0  ;;  %2286 = vmatprep.subr.bf16.mxu1 %v2546_v0  ;;  %v408_v1 = vrot.slane %v2814_v55, 2  ;;  %v536_v3 = vrot.slane %v508_v57, 1  ;;  %v537_v4 = vrot.slane %v2822_v58, 1  ;;  %v2836_v5 = vmul.f32 %v2810_v54, %v2781_v43  ;;  %v2909_v57 = vld [vmem:[%s2787_s5 + $0x60] sm:$0xff] }
  0x92   : > { %v327_v7 = vsel %vm324_vm1, %v325_v60, %v326_v61  ;;  %v617_v8 = vrot.slane %v589_v63, 2  ;;  %v686_v9 = vmul.f32 %v2825_v59, %v2796_v47  ;;  %v718_v10 = vmul.f32 %v2825_v59, %v2798_v48 }
  0x93   : > { %v360_v11 = vadd.f32 %v327_v7, %v264_v50  ;;  %v409_v12 = vsel %vm406_vm2, %v407_v62, %v408_v1  ;;  %v538_v13 = vsel %vm324_vm1, %v536_v3, %v537_v4  ;;  %v618_v14 = vrot.slane %v2836_v5, 2 }
  0x94   : > { %2270 = vmatpush3.bf16.msra.mxu0 %v2269_v29  ;;  %2294 = vmatpush3.bf16.msra.mxu1 %v2269_v29  ;;  %v2860_v16 = vmul.f32 %v2839_v6, %v2798_v48  ;;  %v746_v17 = vrot.slane %v718_v10, 1  ;;  %v799_v18 = vmul.f32 %v2825_v59, %v2800_v49  ;;  %v2866_v19 = vmul.f32 %v2839_v6, %v2800_v49 }
  0x95   : > { %2271 = vmatprep.subr.bf16.mxu0 %v2546_v0  ;;  %2287 = vmatprep.subr.bf16.mxu1 %v2546_v0  ;;  %v442_v21 = vadd.f32 %v409_v12, %v360_v11  ;;  %v619_v22 = vsel %vm406_vm2, %v617_v8, %v618_v14  ;;  %v272_v23 = vmul.f32 %v2771_v38, %v2856_v15  ;;  %v2928_v11 = vld [vmem:[%s2787_s5 + $0x68] sm:$0xff] }
  0x96   : > { %v747_v25 = vrot.slane %v2860_v16, 1  ;;  %v827_v26 = vrot.slane %v799_v18, 2  ;;  %v828_v27 = vrot.slane %v2866_v19, 2  ;;  %v304_v29 = vmul.f32 %v2773_v39, %v2856_v15 }
  0x97   : > { %v490_v33 = vadd.f32 %v476_v56, %v442_v21  ;;  %v2887_v34 = vmul.f32 %v2773_v39, %v2869_v20  ;;  %v386_v35 = vmul.f32 %v2775_v40, %v2856_v15  ;;  %v2893_v37 = vmul.f32 %v2775_v40, %v2869_v20 }
  0x98   : > { %2273 = vmatpush3.bf16.msra.mxu0 %v2763_v30  ;;  %2295 = vmatpush3.bf16.msra.mxu1 %v2763_v30  ;;  %v748_v50 = vsel %vm324_vm1, %v746_v17, %v747_v25  ;;  %v829_v51 = vsel %vm406_vm2, %v827_v26, %v828_v27  ;;  %v337_v53 = vrot.slane %v304_v29, 1  ;;  %v484_v56 = vmul.f32 %v2879_v24, %v2777_v41 }
  0x99   : > { %2274 = vmatprep.subr.bf16.mxu0 %v2546_v0  ;;  %2288 = vmatprep.subr.bf16.mxu1 %v2546_v0  ;;  %v571_v30 = vadd.f32 %v538_v13, %v490_v33  ;;  %v338_v60 = vrot.slane %v2887_v34, 1  ;;  %v419_v62 = vrot.slane %v386_v35, 2  ;;  %v420_v63 = vrot.slane %v2893_v37, 2 }
  0x9a   : > { %v516_v3 = vmul.f32 %v2879_v24, %v2779_v42  ;;  %v2919_v7 = vmul.f32 %v2896_v44, %v2779_v42  ;;  %v597_v8 = vmul.f32 %v2879_v24, %v2781_v43  ;;  %v2925_v10 = vmul.f32 %v2896_v44, %v2781_v43 }
  0x9b   : > { %v652_v12 = vadd.f32 %v619_v22, %v571_v30  ;;  %v339_v13 = vsel %vm324_vm1, %v337_v53, %v338_v60  ;;  %v421_v17 = vsel %vm406_vm2, %v419_v62, %v420_v63  ;;  %v694_v18 = vmul.f32 %v2909_v57, %v2796_v47 }
  0x9c   : > { %2276 = vmatpush3.bf16.msra.mxu0 %v2765_v31  ;;  %2296 = vmatpush3.bf16.msra.mxu1 %v2765_v31  ;;  %v368_v21 = vadd.f32 %v339_v13, %v272_v23  ;;  %v548_v26 = vrot.slane %v516_v3, 1  ;;  %v3607_v29 = vrot.slane %v2919_v7, 1  ;;  %v629_v22 = vrot.slane %v597_v8, 2 }
  0x9d   : > { %2277 = vmatprep.subr.bf16.mxu0 %v2546_v0  ;;  %2289 = vmatprep.subr.bf16.mxu1 %v2546_v0  ;;  %v700_v33 = vadd.f32 %v686_v9, %v652_v12  ;;  %v630_v35 = vrot.slane %v2925_v10, 2  ;;  %v726_v53 = vmul.f32 %v2909_v57, %v2798_v48  ;;  %v2948_v30 = vmul.f32 %v2928_v11, %v2798_v48 }
  0x9e   : > { %v450_v31 = vadd.f32 %v421_v17, %v368_v21  ;;  %v550_v23 = vsel %vm324_vm1, %v548_v26, %v3607_v29  ;;  %v807_v62 = vmul.f32 %v2909_v57, %v2800_v49  ;;  %v2957_v9 = vmul.f32 %v2928_v11, %v2800_v49 }
  0x9f   : > { %v781_v3 = vadd.f32 %v748_v50, %v700_v33  ;;  %v631_v8 = vsel %vm406_vm2, %v629_v22, %v630_v35  ;;  %v758_v12 = vrot.slane %v726_v53, 1  ;;  %v759_v13 = vrot.slane %v2948_v30, 1 }
  0xa0   : > { %2279 = vmatpush3.bf16.msra.mxu0 %v2767_v32  ;;  %2297 = vmatpush3.bf16.msra.mxu1 %v2767_v32  ;;  %v498_v17 = vadd.f32 %v484_v56, %v450_v31  ;;  %v839_v21 = vrot.slane %v807_v62, 2  ;;  %v3608_v26 = vrot.slane %v2957_v9, 2  ;;  %v265_v29 = vmul.f32 %v2771_v38, %v2791_v45 }
  0xa1   : > { %2280 = vmatprep.subr.bf16.mxu0 %v2546_v0  ;;  %2290 = vmatprep.subr.bf16.mxu1 %v2546_v0  ;;  %v862_v50 = vadd.f32 %v829_v51, %v781_v3  ;;  %v760_v22 = vsel %vm324_vm1, %v758_v12, %v759_v13  ;;  %v266_v33 = vmul.f32 %v2794_v46, %v2771_v38  ;;  %v3620_v30 = vrot.slane %v2957_v9, 2 }
  0xa2   : > { %v579_v32 = vadd.f32 %v550_v23, %v498_v17  ;;  %v841_v56 = vsel %vm406_vm2, %v839_v21, %v3608_v26  ;;  %v298_v45 = vmul.f32 %v2794_v46, %v2773_v39  ;;  %v2982_v53 = vmul.f32 %v2810_v54, %v2773_v39 }
  0xa3   : > { %v906_v0 = vcombine.high %v862_v50, %v862_v50  ;;  %v913_v51 = vrot.slane %v862_v50, %v2761_v28  ;;  %v361_v31 = vadd.f32 %v326_v61, %v265_v29  ;;  %v380_v23 = vmul.f32 %v2794_v46, %v2775_v40 }
  0xa4   : > { %2282 = vmatpush3.bf16.msra.mxu0 %v2769_v36  ;;  %2298 = vmatpush3.bf16.msra.mxu1 %v2769_v36  ;;  %v660_v62 = vadd.f32 %v631_v8, %v579_v32  ;;  %v328_v3 = vrot.slane %v298_v45, 1  ;;  %v329_v12 = vrot.slane %v2982_v53, 1  ;;  %v2994_v17 = vmul.f32 %v2810_v54, %v2775_v40 }
  0xa5   : > { %v920_v21 = vrot.slane %v906_v0, %v2761_v28  ;;  %v921_v50 = vcombine.high %v913_v51, %v913_v51  ;;  %v410_v52 = vrot.slane %v380_v23, 2  ;;  %v443_v61 = vadd.f32 %v408_v1, %v361_v31 }
  0xa6   : > { %v708_v46 = vadd.f32 %v694_v18, %v660_v62  ;;  %v330_v36 = vsel %vm324_vm1, %v328_v3, %v329_v12  ;;  %v411_v29 = vrot.slane %v2994_v17, 2  ;;  %v477_v8 = vmul.f32 %v2810_v54, %v2777_v41 }
  0xa7   : > { %v922_v32 = vcombine.high %v920_v21, %v920_v21  ;;  %v1137_v45 = vcombine.low %v913_v51, %v921_v50  ;;  %v362_v26 = vadd.f32 %v330_v36, %v266_v33  ;;  %v478_v0 = vmul.f32 %v2825_v59, %v2777_v41  ;;  %v3028_v36 = vld [vmem:[%s2787_s5 + $0x30] sm:$0xff] }
  0xa8   : > { %v789_v23 = vadd.f32 %v760_v22, %v708_v46  ;;  %v412_v55 = vsel %vm406_vm2, %v410_v52, %v411_v29  ;;  %v491_v1 = vadd.f32 %v477_v8, %v443_v61  ;;  %v510_v18 = vmul.f32 %v2825_v59, %v2779_v42 }
  0xa9   : > { %v1138_v31 = vcombine.low %v920_v21, %v922_v32  ;;  %v1145_v62 = vrot.slane %v1137_v45, %v2761_v28  ;;  %v444_v3 = vadd.f32 %v412_v55, %v362_v26  ;;  %v3015_v33 = vmul.f32 %v2839_v6, %v2779_v42 }
  0xaa   : > { %v870_v51 = vadd.f32 %v841_v56, %v789_v23  ;;  %v539_v22 = vrot.slane %v510_v18, 1  ;;  %v572_v50 = vadd.f32 %v537_v4, %v491_v1  ;;  %v591_v52 = vmul.f32 %v2825_v59, %v2781_v43  ;;  %v3034_v4 = vld [vmem:[%s2787_s5 + $0x38] sm:$0xff] }
  0xab   : > { %v1152_v61 = vrot.slane %v1138_v31, %v2761_v28  ;;  %v492_v46 = vadd.f32 %v478_v0, %v444_v3  ;;  %v540_v21 = vrot.slane %v3015_v33, 1  ;;  %v3025_v26 = vmul.f32 %v2839_v6, %v2781_v43 }
  0xac   : > { %v1038_v8 = vcombine.high %v870_v51, %v870_v51  ;;  %v1045_v56 = vrot.slane %v870_v51, %v2761_v28  ;;  %v620_v32 = vrot.slane %v591_v52, 2  ;;  %v653_v58 = vadd.f32 %v618_v14, %v572_v50 }
  0xad   : > { %v1153_v45 = vcombine.low %v1145_v62, %v1152_v61  ;;  %v541_v0 = vsel %vm324_vm1, %v539_v22, %v540_v21  ;;  %v3611_v23 = vrot.slane %v3025_v26, 2  ;;  %v687_v55 = vmul.f32 %v2839_v6, %v2796_v47 }
  0xae   : > { %v1052_v1 = vrot.slane %v1038_v8, %v2761_v28  ;;  %v1053_v18 = vcombine.high %v1045_v56, %v1045_v56  ;;  %v573_v31 = vadd.f32 %v541_v0, %v492_v46  ;;  %v688_v5 = vmul.f32 %v3028_v36, %v2796_v47 }
  0xaf   : > { %2221 = vmatmul.mubr.f32.vlgmr.msra.gmra.mrb[0].mxu0 %v1153_v45  ;;  %v622_v14 = vsel %vm406_vm2, %v620_v32, %v3611_v23  ;;  %v701_v62 = vadd.f32 %v687_v55, %v653_v58  ;;  %v720_v3 = vmul.f32 %v3028_v36, %v2798_v48  ;;  %v3052_v51 = vmul.f32 %v3034_v4, %v2798_v48 }
  0xb0   : > { %v1054_v22 = vcombine.high %v1052_v1, %v1052_v1  ;;  %v1256_v50 = vcombine.low %v1045_v56, %v1053_v18  ;;  %2223 = vmatprep.mubr.msk.f32.mxu0 %vm2547_vm0, %v2548_v2  ;;  %v654_v52 = vadd.f32 %v622_v14, %v573_v31  ;;  %v801_v61 = vmul.f32 %v3028_v36, %v2800_v49 }
  0xb1   : > { %v749_v46 = vrot.slane %v720_v3, 1  ;;  %v3610_v8 = vrot.slane %v3052_v51, 1  ;;  %v782_v32 = vadd.f32 %v747_v25, %v701_v62  ;;  %v3063_v58 = vmul.f32 %v3034_v4, %v2800_v49 }
  0xb2   : > { %v1257_v45 = vcombine.low %v1052_v1, %v1054_v22  ;;  %v1264_v56 = vrot.slane %v1256_v50, %v2761_v28  ;;  %v702_v0 = vadd.f32 %v688_v5, %v654_v52  ;;  %v830_v55 = vrot.slane %v801_v61, 2 }
  0xb3   : > { %v751_v18 = vsel %vm324_vm1, %v749_v46, %v3610_v8  ;;  %v3609_v31 = vrot.slane %v3063_v58, 2  ;;  %v863_v14 = vadd.f32 %v828_v27, %v782_v32  ;;  %v273_v16 = vmul.f32 %v2771_v38, %v2869_v20  ;;  %v3140_v8 = vld [vmem:[%s2787_s5 + $0x78] sm:$0xff] }
  0xb4   : > { %v1271_v25 = vrot.slane %v1257_v45, %v2761_v28  ;;  %v783_v62 = vadd.f32 %v751_v18, %v702_v0  ;;  %v274_v1 = vmul.f32 %v2879_v24, %v2771_v38  ;;  %v306_v5 = vmul.f32 %v2879_v24, %v2773_v39 }
  0xb5   : > { %v832_v3 = vsel %vm406_vm2, %v830_v55, %v3609_v31  ;;  %v923_v22 = vcombine.high %v863_v14, %v863_v14  ;;  %v930_v19 = vrot.slane %v863_v14, %v2761_v28  ;;  %v3085_v27 = vmul.f32 %v2896_v44, %v2773_v39 }
  0xb6   : > { %v1272_v50 = vcombine.low %v1264_v56, %v1271_v25  ;;  %v3087_v52 = vadd.f32 %v832_v3, %v783_v62  ;;  %v340_v61 = vrot.slane %v306_v5, 1  ;;  %v369_v46 = vadd.f32 %v338_v60, %v273_v16 }
  0xb7   : > { %v937_v32 = vrot.slane %v923_v22, %v2761_v28  ;;  %v938_v45 = vcombine.high %v930_v19, %v930_v19  ;;  %v341_v0 = vrot.slane %v3085_v27, 1  ;;  %v388_v55 = vmul.f32 %v2879_v24, %v2775_v40 }
  0xb8   : > { %2242 = vmatmul.mubr.f32.vlgmr.msra.gmra.mrb[0].mxu1 %v1272_v50  ;;  %v3097_v18 = vrot.slane %v3087_v52, %v2761_v28  ;;  %v3101_v56 = vmul.f32 %v2896_v44, %v2775_v40  ;;  %v451_v34 = vadd.f32 %v420_v63, %v369_v46  ;;  %v485_v60 = vmul.f32 %v2896_v44, %v2777_v41 }
  0xb9   : > { %v1154_v14 = vcombine.low %v930_v19, %v938_v45  ;;  %2244 = vmatprep.mubr.msk.f32.mxu1 %vm2547_vm0, %v2548_v2  ;;  %v342_v16 = vsel %vm324_vm1, %v340_v61, %v341_v0  ;;  %v422_v25 = vrot.slane %v388_v55, 2  ;;  %v486_v62 = vmul.f32 %v2909_v57, %v2777_v41 }
  0xba   : > { %v1155_v5 = vcombine.low %v937_v32, %v3097_v18  ;;  %v370_v37 = vadd.f32 %v342_v16, %v274_v1  ;;  %v423_v63 = vrot.slane %v3101_v56, 2  ;;  %v499_v3 = vadd.f32 %v485_v60, %v451_v34  ;;  %v3136_v34 = vld [vmem:[%s2787_s5 + $0x70] sm:$0xff] }
  0xbb   : > { %v1162_v22 = vrot.slane %v1154_v14, %v2761_v28  ;;  %v518_v19 = vmul.f32 %v2909_v57, %v2779_v42  ;;  %v3121_v50 = vmul.f32 %v2928_v11, %v2779_v42  ;;  %v599_v61 = vmul.f32 %v2909_v57, %v2781_v43 }
  0xbc   : > { %v1169_v46 = vrot.slane %v1155_v5, %v2761_v28  ;;  %v424_v1 = vsel %vm406_vm2, %v422_v25, %v423_v63  ;;  %v3619_v32 = vrot.slane %v2919_v7, 1  ;;  %v3133_v55 = vmul.f32 %v2928_v11, %v2781_v43 }
  0xbd   : > { %v452_v60 = vadd.f32 %v424_v1, %v370_v37  ;;  %v551_v14 = vrot.slane %v518_v19, 1  ;;  %v552_v16 = vrot.slane %v3121_v50, 1  ;;  %v632_v31 = vrot.slane %v599_v61, 2 }
  0xbe   : > { %v580_v45 = vadd.f32 %v3619_v32, %v499_v3  ;;  %v1170_v5 = vcombine.low %v1162_v22, %v1169_v46  ;;  %v633_v23 = vrot.slane %v3133_v55, 2  ;;  %v695_v25 = vmul.f32 %v2928_v11, %v2796_v47 }
  0xbf   : > { %v500_v3 = vadd.f32 %v486_v62, %v452_v60  ;;  %v553_v37 = vsel %vm324_vm1, %v551_v14, %v552_v16  ;;  %v696_v19 = vmul.f32 %v3136_v34, %v2796_v47  ;;  %v728_v61 = vmul.f32 %v3136_v34, %v2798_v48 }
  0xc0   : > { %v661_v7 = vadd.f32 %v630_v35, %v580_v45  ;;  %2224 = vmatmul.mubr.f32.gmra.mrb[2].mxu0 %v1170_v5  ;;  %v634_v10 = vsel %vm406_vm2, %v632_v31, %v633_v23  ;;  %v3159_v22 = vmul.f32 %v3140_v8, %v2798_v48  ;;  %v809_v62 = vmul.f32 %v3136_v34, %v2800_v49 }
  0xc1   : > { %v581_v46 = vadd.f32 %v553_v37, %v500_v3  ;;  %v761_v1 = vrot.slane %v728_v61, 1  ;;  %v3165_v32 = vmul.f32 %v3140_v8, %v2800_v49  ;;  %2226 = vmatprep.mubr.msk.f32.mxu0 %vm2547_vm0, %v2548_v2  ;;  %v267_v31 = vmul.f32 %v2810_v54, %v2771_v38 }
  0xc2   : > { %v709_v35 = vadd.f32 %v695_v25, %v661_v7  ;;  %v762_v45 = vrot.slane %v3159_v22, 1  ;;  %v842_v14 = vrot.slane %v809_v62, 2  ;;  %v479_v5 = vmul.f32 %v2839_v6, %v2777_v41 }
  0xc3   : > { %v662_v7 = vadd.f32 %v634_v10, %v581_v46  ;;  %v843_v25 = vrot.slane %v3165_v32, 2  ;;  %v363_v3 = vadd.f32 %v329_v12, %v267_v31  ;;  %v689_v37 = vmul.f32 %v3034_v4, %v2796_v47 }
  0xc4   : > { %v790_v60 = vadd.f32 %v759_v13, %v709_v35  ;;  %v763_v54 = vsel %vm324_vm1, %v761_v1, %v762_v45  ;;  %v939_v61 = vcombine.high %v3087_v52, %v3087_v52  ;;  %v954_v10 = vcombine.high %v3097_v18, %v3097_v18 }
  0xc5   : > { %v710_v35 = vadd.f32 %v696_v19, %v662_v7  ;;  %v844_v53 = vsel %vm406_vm2, %v842_v14, %v843_v25  ;;  %v445_v12 = vadd.f32 %v411_v29, %v363_v3  ;;  %v275_v62 = vmul.f32 %v2896_v44, %v2771_v38 }
  0xc6   : > { %v871_v13 = vadd.f32 %v3620_v30, %v790_v60  ;;  %v953_v1 = vrot.slane %v939_v61, %v2761_v28  ;;  %v487_v52 = vmul.f32 %v2928_v11, %v2777_v41  ;;  %v697_v17 = vmul.f32 %v3140_v8, %v2796_v47 }
  0xc7   : > { %v791_v18 = vadd.f32 %v763_v54, %v710_v35  ;;  %v493_v19 = vadd.f32 %v479_v5, %v445_v12  ;;  %v371_v31 = vadd.f32 %v341_v0, %v275_v62  ;;  %v268_v27 = vmul.f32 %v2825_v59, %v2771_v38 }
  0xc8   : > { %v1055_v46 = vcombine.high %v871_v13, %v871_v13  ;;  %v1062_v9 = vrot.slane %v871_v13, %v2761_v28  ;;  %v955_v14 = vcombine.high %v953_v1, %v953_v1  ;;  %v3206_v7 = vcombine.low %v954_v10, %v953_v1 }
  0xc9   : > { %v872_v3 = vadd.f32 %v844_v53, %v791_v18  ;;  %v574_v30 = vadd.f32 %v540_v21, %v493_v19  ;;  %v453_v54 = vadd.f32 %v423_v63, %v371_v31  ;;  %v300_v13 = vmul.f32 %v2825_v59, %v2773_v39 }
  0xca   : > { %v1069_v29 = vrot.slane %v1055_v46, %v2761_v28  ;;  %v1070_v60 = vcombine.high %v1062_v9, %v1062_v9  ;;  %v1179_v5 = vrot.slane %v3206_v7, %v2761_v28  ;;  %v3220_v61 = vmul.f32 %v2839_v6, %v2773_v39 }
  0xcb   : > { %v1078_v33 = vrot.slane %v872_v3, %v2761_v28  ;;  %v3621_v21 = vrot.slane %v3025_v26, 2  ;;  %v501_v63 = vadd.f32 %v487_v52, %v453_v54  ;;  %v1071_v10 = vcombine.high %v872_v3, %v872_v3 }
  0xcc   : > { %v1273_v0 = vcombine.low %v1062_v9, %v1070_v60  ;;  %v331_v53 = vrot.slane %v300_v13, 1  ;;  %v332_v12 = vrot.slane %v3220_v61, 1  ;;  %v382_v62 = vmul.f32 %v2825_v59, %v2775_v40 }
  0xcd   : > { %v655_v56 = vadd.f32 %v3621_v21, %v574_v30  ;;  %v1274_v46 = vcombine.low %v1069_v29, %v1078_v33  ;;  %v582_v1 = vadd.f32 %v552_v16, %v501_v63  ;;  %v1085_v18 = vrot.slane %v1071_v10, %v2761_v28 }
  0xce   : > { %v1281_v35 = vrot.slane %v1273_v0, %v2761_v28  ;;  %v1086_v19 = vcombine.high %v1078_v33, %v1078_v33  ;;  %v333_v26 = vsel %vm324_vm1, %v331_v53, %v332_v12  ;;  %v3237_v52 = vmul.f32 %v2839_v6, %v2775_v40 }
  0xcf   : > { %v703_v9 = vadd.f32 %v689_v37, %v655_v56  ;;  %v413_v31 = vrot.slane %v382_v62, 2  ;;  %v1288_v60 = vrot.slane %v1274_v46, %v2761_v28  ;;  %v3622_v59 = vrot.slane %v3052_v51, 1 }
  0xd0   : > { %v663_v50 = vadd.f32 %v633_v23, %v582_v1  ;;  %v1087_v16 = vcombine.high %v1085_v18, %v1085_v18  ;;  %v1290_v29 = vcombine.low %v1086_v19, %v1085_v18  ;;  %v364_v7 = vadd.f32 %v333_v26, %v268_v27 }
  0xd1   : > { %v784_v37 = vadd.f32 %v3622_v59, %v703_v9  ;;  %v414_v3 = vrot.slane %v3237_v52, 2  ;;  %v480_v30 = vmul.f32 %v3028_v36, %v2777_v41  ;;  %v1289_v54 = vcombine.low %v1281_v35, %v1288_v60 }
  0xd2   : > { %v3623_v0 = vrot.slane %v3063_v58, 2  ;;  %v711_v33 = vadd.f32 %v697_v17, %v663_v50  ;;  %v512_v51 = vmul.f32 %v3028_v36, %v2779_v42  ;;  %v1298_v21 = vrot.slane %v1290_v29, %v2761_v28 }
  0xd3   : > { %v415_v23 = vsel %vm406_vm2, %v413_v31, %v414_v3  ;;  %v3257_v55 = vmul.f32 %v3034_v4, %v2779_v42  ;;  %v593_v27 = vmul.f32 %v3028_v36, %v2781_v43  ;;  %2245 = vmatmul.mubr.f32.gmra.mrb[2].mxu1 %v1289_v54  ;;  %v3269_v35 = vmul.f32 %v3034_v4, %v2781_v43 }
  0xd4   : > { %v865_v13 = vadd.f32 %v3623_v0, %v784_v37  ;;  %v792_v17 = vadd.f32 %v762_v45, %v711_v33  ;;  %v446_v56 = vadd.f32 %v415_v23, %v364_v7  ;;  %v542_v63 = vrot.slane %v512_v51, 1  ;;  %2247 = vmatprep.mubr.msk.f32.mxu1 %vm2547_vm0, %v2548_v2 }
  0xd5   : > { %v543_v10 = vrot.slane %v3257_v55, 1  ;;  %v623_v53 = vrot.slane %v593_v27, 2  ;;  %v690_v62 = vmul.f32 %v2796_v47, %v2856_v15  ;;  %v722_v9 = vmul.f32 %v2798_v48, %v2856_v15 }
  0xd6   : > { %v963_v58 = vrot.slane %v865_v13, %v2761_v28  ;;  %v3275_v22 = vadd.f32 %v843_v25, %v792_v17  ;;  %v494_v45 = vadd.f32 %v480_v30, %v446_v56  ;;  %v624_v18 = vrot.slane %v3269_v35, 2 }
  0xd7   : > { %v544_v1 = vsel %vm324_vm1, %v542_v63, %v543_v10  ;;  %v3285_v19 = vmul.f32 %v2798_v48, %v2869_v20  ;;  %v752_v31 = vrot.slane %v722_v9, 1  ;;  %v3300_v37 = vmul.f32 %v2800_v49, %v2869_v20 }
  0xd8   : > { %v1172_v46 = vcombine.low %v955_v14, %v963_v58  ;;  %v803_v14 = vmul.f32 %v2800_v49, %v2856_v15  ;;  %v3292_v25 = vrot.slane %v3275_v22, %v2761_v28  ;;  %v575_v26 = vadd.f32 %v544_v1, %v494_v45 }
  0xd9   : > { %v625_v60 = vsel %vm406_vm2, %v623_v53, %v624_v18  ;;  %v753_v59 = vrot.slane %v3285_v19, 1  ;;  %v956_v54 = vcombine.high %v865_v13, %v865_v13  ;;  %v3612_v33 = vrot.slane %v3300_v37, 2 }
  0xda   : > { %v1186_v32 = vrot.slane %v1172_v46, %v2761_v28  ;;  %v833_v50 = vrot.slane %v803_v14, 2  ;;  %v1291_v7 = vcombine.low %v1087_v16, %v3292_v25  ;;  %v656_v30 = vadd.f32 %v625_v60, %v575_v26 }
  0xdb   : > { %v754_v0 = vsel %vm324_vm1, %v752_v31, %v753_v59  ;;  %v971_v51 = vcombine.high %v963_v58, %v963_v58  ;;  %v970_v17 = vrot.slane %v956_v54, %v2761_v28  ;;  %v3318_v13 = vmul.f32 %v2928_v11, %v2773_v39 }
  0xdc   : > { %v1187_v29 = vcombine.low %v1179_v5, %v1186_v32  ;;  %v1305_v23 = vrot.slane %v1291_v7, %v2761_v28  ;;  %v704_v27 = vadd.f32 %v690_v62, %v656_v30  ;;  %v308_v5 = vmul.f32 %v2909_v57, %v2773_v39  ;;  %v2153_v30 = vld [vmem:[%s2787_s5 + $0x88] sm:$0xff] }
  0xdd   : > { %v835_v16 = vsel %vm406_vm2, %v833_v50, %v3612_v33  ;;  %v390_v58 = vmul.f32 %v2909_v57, %v2775_v40  ;;  %v3324_v56 = vmul.f32 %v2928_v11, %v2775_v40  ;;  %v276_v62 = vmul.f32 %v2909_v57, %v2771_v38  ;;  %v2152_v57 = vld [vmem:[%s2787_s5 + $0x80] sm:$0xff] }
  0xde   : > { %2227 = vmatmul.mubr.f32.gmra.mrb[4].mxu0 %v1187_v29  ;;  %v1306_v63 = vcombine.low %v1298_v21, %v1305_v23  ;;  %v785_v53 = vadd.f32 %v754_v0, %v704_v27  ;;  %v343_v46 = vrot.slane %v308_v5, 1  ;;  %v1188_v45 = vcombine.low %v971_v51, %v970_v17 }
  0xdf   : > { %2229 = vmatprep.mubr.msk.f32.mxu0 %vm2547_vm0, %v2548_v2  ;;  %v344_v9 = vrot.slane %v3318_v13, 1  ;;  %v425_v1 = vrot.slane %v390_v58, 2  ;;  %v426_v14 = vrot.slane %v3324_v56, 2  ;;  %v488_v26 = vmul.f32 %v3136_v34, %v2777_v41 }
  0xe0   : > { %2248 = vmatmul.mubr.f32.gmra.mrb[4].mxu1 %v1306_v63  ;;  %v866_v32 = vadd.f32 %v835_v16, %v785_v53  ;;  %v520_v21 = vmul.f32 %v3136_v34, %v2779_v42  ;;  %v3336_v31 = vmul.f32 %v3140_v8, %v2779_v42  ;;  %v601_v29 = vmul.f32 %v3136_v34, %v2781_v43 }
  0xe1   : > { %2250 = vmatprep.mubr.msk.f32.mxu1 %vm2547_vm0, %v2548_v2  ;;  %v345_v60 = vsel %vm324_vm1, %v343_v46, %v344_v9  ;;  %v427_v50 = vsel %vm406_vm2, %v425_v1, %v426_v14  ;;  %v3349_v7 = vmul.f32 %v3140_v8, %v2781_v43  ;;  %v1196_v27 = vrot.slane %v1188_v45, %v2761_v28 }
  0xe2   : > { %v979_v54 = vrot.slane %v866_v32, %v2761_v28  ;;  %v372_v0 = vadd.f32 %v345_v60, %v276_v62  ;;  %v554_v51 = vrot.slane %v520_v21, 1  ;;  %v555_v23 = vrot.slane %v3336_v31, 1 }
  0xe3   : > { %v635_v17 = vrot.slane %v601_v29, 2  ;;  %v636_v5 = vrot.slane %v3349_v7, 2  ;;  %v730_v16 = vmul.f32 %v2152_v57, %v2798_v48  ;;  %v3361_v63 = vmul.f32 %v2153_v30, %v2798_v48 }
  0xe4   : > { %v987_v13 = vcombine.high %v979_v54, %v979_v54  ;;  %v454_v34 = vadd.f32 %v427_v50, %v372_v0  ;;  %v556_v58 = vsel %vm324_vm1, %v554_v51, %v555_v23  ;;  %v811_v46 = vmul.f32 %v2152_v57, %v2800_v49 }
  0xe5   : > { %v637_v53 = vsel %vm406_vm2, %v635_v17, %v636_v5  ;;  %v764_v62 = vrot.slane %v730_v16, 1  ;;  %v3368_v45 = vmul.f32 %v2153_v30, %v2800_v49  ;;  %v765_v60 = vrot.slane %v3361_v63, 1 }
  0xe6   : > { %v1189_v1 = vcombine.low %v979_v54, %v987_v13  ;;  %v502_v21 = vadd.f32 %v488_v26, %v454_v34  ;;  %v1088_v50 = vcombine.high %v3275_v22, %v3275_v22  ;;  %v845_v29 = vrot.slane %v811_v46, 2 }
  0xe7   : > { %v846_v0 = vrot.slane %v3368_v45, 2  ;;  %v1103_v51 = vcombine.high %v3292_v25, %v3292_v25  ;;  %v269_v17 = vmul.f32 %v2839_v6, %v2771_v38  ;;  %v698_v54 = vmul.f32 %v2152_v57, %v2796_v47 }
  0xe8   : > { %v1203_v16 = vrot.slane %v1189_v1, %v2761_v28  ;;  %v583_v33 = vadd.f32 %v556_v58, %v502_v21  ;;  %v1102_v26 = vrot.slane %v1088_v50, %v2761_v28  ;;  %v766_v22 = vsel %vm324_vm1, %v764_v62, %v765_v60 }
  0xe9   : > { %v847_v13 = vsel %vm406_vm2, %v845_v29, %v846_v0  ;;  %v365_v25 = vadd.f32 %v332_v12, %v269_v17  ;;  %v481_v6 = vmul.f32 %v3034_v4, %v2777_v41  ;;  %v691_v57 = vmul.f32 %v2796_v47, %v2869_v20 }
  0xea   : > { %v1204_v34 = vcombine.low %v1196_v27, %v1203_v16  ;;  %v664_v58 = vadd.f32 %v637_v53, %v583_v33  ;;  %v972_v46 = vcombine.high %v866_v32, %v866_v32  ;;  %v3393_v1 = vcombine.low %v1103_v51, %v1102_v26 }
  0xeb   : > { %v447_v62 = vadd.f32 %v414_v3, %v365_v25  ;;  %v277_v21 = vmul.f32 %v2928_v11, %v2771_v38  ;;  %v489_v61 = vmul.f32 %v3140_v8, %v2777_v41  ;;  %v699_v33 = vmul.f32 %v2153_v30, %v2796_v47 }
  0xec   : > { %2230 = vmatmul.mubr.f32.gmra.mrb[6].mxu0 %v1204_v34  ;;  %v712_v12 = vadd.f32 %v698_v54, %v664_v58  ;;  %v986_v27 = vrot.slane %v972_v46, %v2761_v28  ;;  %v270_v32 = vmul.f32 %v3028_v36, %v2771_v38  ;;  %v302_v11 = vmul.f32 %v3028_v36, %v2773_v39 }
  0xed   : > { %2232 = vmatprep.mubr.msk.f32.mxu0 %vm2547_vm0, %v2548_v2  ;;  %v495_v52 = vadd.f32 %v481_v6, %v447_v62  ;;  %v373_v3 = vadd.f32 %v344_v9, %v277_v21  ;;  %v3411_v8 = vmul.f32 %v3034_v4, %v2773_v39  ;;  %v384_v30 = vmul.f32 %v3028_v36, %v2775_v40 }
  0xee   : > { %v793_v53 = vadd.f32 %v766_v22, %v712_v12  ;;  %v988_v50 = vcombine.high %v986_v27, %v986_v27  ;;  %v3417_v29 = vmul.f32 %v3034_v4, %v2775_v40  ;;  %v334_v17 = vrot.slane %v302_v11, 1 }
  0xef   : > { %v576_v51 = vadd.f32 %v543_v10, %v495_v52  ;;  %v455_v9 = vadd.f32 %v426_v14, %v373_v3  ;;  %v335_v16 = vrot.slane %v3411_v8, 1  ;;  %v1315_v54 = vrot.slane %v3393_v1, %v2761_v28 }
  0xf0   : > { %v874_v39 = vadd.f32 %v847_v13, %v793_v53  ;;  %v416_v26 = vrot.slane %v384_v30, 2  ;;  %v417_v36 = vrot.slane %v3417_v29, 2  ;;  %v3429_v22 = vcombine.low %v986_v27, %v988_v50 }
  0xf1   : > { %v657_v40 = vadd.f32 %v624_v18, %v576_v51  ;;  %v503_v55 = vadd.f32 %v489_v61, %v455_v9  ;;  %v336_v10 = vsel %vm324_vm1, %v334_v17, %v335_v16  ;;  %v482_v25 = vmul.f32 %v2777_v41, %v2856_v15 }
  0xf2   : > { %v1111_v56 = vrot.slane %v874_v39, %v2761_v28  ;;  %v1104_v14 = vcombine.high %v874_v39, %v874_v39  ;;  %v366_v13 = vadd.f32 %v336_v10, %v270_v32  ;;  %v418_v35 = vsel %vm406_vm2, %v416_v26, %v417_v36 }
  0xf3   : > { %v705_v6 = vadd.f32 %v691_v57, %v657_v40  ;;  %v584_v34 = vadd.f32 %v555_v23, %v503_v55  ;;  %v514_v18 = vmul.f32 %v2779_v42, %v2856_v15  ;;  %v3447_v62 = vmul.f32 %v2779_v42, %v2869_v20 }
  0xf4   : > { %v1119_v58 = vcombine.high %v1111_v56, %v1111_v56  ;;  %v1118_v46 = vrot.slane %v1104_v14, %v2761_v28  ;;  %v448_v1 = vadd.f32 %v418_v35, %v366_v13  ;;  %v595_v21 = vmul.f32 %v2781_v43, %v2856_v15 }
  0xf5   : > { %v786_v57 = vadd.f32 %v753_v59, %v705_v6  ;;  %v665_v31 = vadd.f32 %v636_v5, %v584_v34  ;;  %v545_v23 = vrot.slane %v514_v18, 1  ;;  %v546_v32 = vrot.slane %v3447_v62, 1 }
  0xf6   : > { %v1308_v61 = vcombine.low %v1111_v56, %v1119_v58  ;;  %v1120_v12 = vcombine.high %v1118_v46, %v1118_v46  ;;  %v496_v27 = vadd.f32 %v482_v25, %v448_v1  ;;  %v3624_v52 = vrot.slane %v3300_v37, 2 }
  0xf7   : > { %v713_v42 = vadd.f32 %v699_v33, %v665_v31  ;;  %v3460_v19 = vmul.f32 %v2781_v43, %v2869_v20  ;;  %v626_v59 = vrot.slane %v595_v21, 2  ;;  %v1213_v5 = vrot.slane %v3429_v22, %v2761_v28 }
  0xf8   : > { %v867_v3 = vadd.f32 %v3624_v52, %v786_v57  ;;  %v1322_v7 = vrot.slane %v1308_v61, %v2761_v28  ;;  %v1324_v15 = vcombine.low %v1118_v46, %v1120_v12  ;;  %v547_v11 = vsel %vm324_vm1, %v545_v23, %v546_v32 }
  0xf9   : > { %v794_v37 = vadd.f32 %v765_v60, %v713_v42  ;;  %v577_v50 = vadd.f32 %v547_v11, %v496_v27  ;;  %v627_v33 = vrot.slane %v3460_v19, 2  ;;  %v692_v43 = vmul.f32 %v2879_v24, %v2796_v47 }
  0xfa   : > { %v996_v53 = vrot.slane %v867_v3, %v2761_v28  ;;  %v1323_v30 = vcombine.low %v1315_v54, %v1322_v7  ;;  %v724_v51 = vmul.f32 %v2879_v24, %v2798_v48  ;;  %v725_v9 = vmul.f32 %v2896_v44, %v2798_v48 }
  0xfb   : > { %v875_v39 = vadd.f32 %v846_v0, %v794_v37  ;;  %v628_v63 = vsel %vm406_vm2, %v626_v59, %v627_v33  ;;  %v805_v60 = vmul.f32 %v2879_v24, %v2800_v49  ;;  %v806_v22 = vmul.f32 %v2896_v44, %v2800_v49 }
  0xfc   : > { %v1004_v17 = vcombine.high %v996_v53, %v996_v53  ;;  %2251 = vmatmul.mubr.f32.gmra.mrb[6].mxu1 %v1323_v30  ;;  %v658_v54 = vadd.f32 %v628_v63, %v577_v50  ;;  %v755_v26 = vrot.slane %v724_v51, 1  ;;  %v756_v40 = vrot.slane %v725_v9, 1 }
  0xfd   : > { %2253 = vmatprep.mubr.msk.f32.mxu1 %vm2547_vm0, %v2548_v2  ;;  %v1128_v48 = vrot.slane %v875_v39, %v2761_v28  ;;  %v836_v45 = vrot.slane %v805_v60, 2  ;;  %v989_v0 = vcombine.high %v867_v3, %v867_v3  ;;  %v837_v14 = vrot.slane %v806_v22, 2 }
  0xfe   : > { %v1206_v55 = vcombine.low %v996_v53, %v1004_v17  ;;  %v706_v10 = vadd.f32 %v692_v43, %v658_v54  ;;  %v757_v56 = vsel %vm324_vm1, %v755_v26, %v756_v40  ;;  %v271_v24 = vmul.f32 %v3034_v4, %v2771_v38 }
  0xff   : > { %v1136_v25 = vcombine.high %v1128_v48, %v1128_v48  ;;  %v838_v49 = vsel %vm406_vm2, %v836_v45, %v837_v14  ;;  %v483_v35 = vmul.f32 %v2777_v41, %v2869_v20  ;;  %v1332_v46 = vrot.slane %v1324_v15, %v2761_v28 }
 0x100   : > { %v1220_v13 = vrot.slane %v1206_v55, %v2761_v28  ;;  %v787_v6 = vadd.f32 %v757_v56, %v706_v10  ;;  %v367_v34 = vadd.f32 %v335_v16, %v271_v24  ;;  %v1121_v1 = vcombine.high %v875_v39, %v875_v39 }
 0x101   : > { %v1325_v58 = vcombine.low %v1128_v48, %v1136_v25  ;;  %v1003_v38 = vrot.slane %v989_v0, %v2761_v28  ;;  %v693_v23 = vmul.f32 %v2896_v44, %v2796_v47 }
 0x102   : > { %v1221_v18 = vcombine.low %v1213_v5, %v1220_v13  ;;  %v868_v62 = vadd.f32 %v838_v49, %v787_v6  ;;  %v449_v4 = vadd.f32 %v417_v36, %v367_v34  ;;  %v1135_v8 = vrot.slane %v1121_v1, %v2761_v28 }
 0x103   : > { %v1339_v57 = vrot.slane %v1325_v58, %v2761_v28 }
 0x104   : > { %2233 = vmatmul.mubr.f32.gmra.mrb[8].mxu0 %v1221_v18  ;;  %v1005_v41 = vcombine.high %v868_v62, %v868_v62  ;;  %v1012_v20 = vrot.slane %v868_v62, %v2761_v28  ;;  %v497_v16 = vadd.f32 %v483_v35, %v449_v4  ;;  %v1347_v12 = vrot.slane %v1135_v8, %v2761_v28 }
 0x105   : > { %2235 = vmatprep.mubr.msk.f32.mxu0 %vm2547_vm0, %v2548_v2  ;;  %v1340_v31 = vcombine.low %v1332_v46, %v1339_v57 }
 0x106   : > { %v1019_v21 = vrot.slane %v1005_v41, %v2761_v28  ;;  %v1020_v29 = vcombine.high %v1012_v20, %v1012_v20  ;;  %v1222_v36 = vcombine.low %v1003_v38, %v1012_v20  ;;  %v578_v61 = vadd.f32 %v546_v32, %v497_v16 }
 0x107   : > { %2254 = vmatmul.mubr.f32.gmra.mrb[8].mxu1 %v1340_v31 }
 0x108   : > { %v1223_v27 = vcombine.low %v1020_v29, %v1019_v21  ;;  %v1230_v52 = vrot.slane %v1222_v36, %v2761_v28  ;;  %v659_v3 = vadd.f32 %v627_v33, %v578_v61  ;;  %2256 = vmatprep.mubr.msk.f32.mxu1 %vm2547_vm0, %v2548_v2  ;;  %v1021_v7 = vcombine.high %v1019_v21, %v1019_v21 }
 0x10a   : > { %v1237_v42 = vrot.slane %v1223_v27, %v2761_v28  ;;  %v707_v19 = vadd.f32 %v693_v23, %v659_v3 }
 0x10b   : > { %2257 = vmatmul.mubr.f32.gmra.mrb[10].mxu1 %v1347_v12 }
 0x10c   : > { %v1238_v47 = vcombine.low %v1230_v52, %v1237_v42  ;;  %v788_v44 = vadd.f32 %v756_v40, %v707_v19 }
 0x10e   : > { %2236 = vmatmul.mubr.f32.gmra.mrb[10].mxu0 %v1238_v47  ;;  %v869_v59 = vadd.f32 %v837_v14, %v788_v44 }
 0x10f   : > { %2238 = vmatprep.mubr.msk.f32.mxu0 %vm2547_vm0, %v2548_v2 }
 0x110   : > { %v1022_v32 = vcombine.high %v869_v59, %v869_v59  ;;  %v1029_v5 = vrot.slane %v869_v59, %v2761_v28 }
 0x112   : > { %v1036_v15 = vrot.slane %v1022_v32, %v2761_v28  ;;  %v1037_v11 = vcombine.high %v1029_v5, %v1029_v5  ;;  %v1239_v53 = vcombine.low %v1021_v7, %v1029_v5 }
 0x114   : > { %v1240_v37 = vcombine.low %v1037_v11, %v1036_v15  ;;  %v1247_v50 = vrot.slane %v1239_v53, %v2761_v28 }
 0x116   : > { %v1254_v33 = vrot.slane %v1240_v37, %v2761_v28 }
 0x118   : > { %v1255_v30 = vcombine.low %v1247_v50, %v1254_v33 }
 0x11a   : > { %2239 = vmatmul.mubr.f32.gmra.mrb[12].mxu0 %v1255_v30 }
 0x182   : > { %v1427_v43 = vpop.f32.mrb[0].mxu0 }
 0x183   : > { %v1504_v51 = vcombine.high %v1427_v43, %v1427_v43  ;;  %v1511_v9 = vrot.slane %v1427_v43, %v2761_v28  ;;  %v2222_v2 = vpop.f32.mrb[1].mxu0 }
 0x185   : > { %v1518_v17 = vrot.slane %v1504_v51, %v2761_v28  ;;  %v1519_v39 = vcombine.high %v1511_v9, %v1511_v9 }
 0x187   : > { %v1520_v63 = vcombine.high %v1518_v17, %v1518_v17  ;;  %v1715_v60 = vcombine.low %v1511_v9, %v1519_v39 }
 0x189   : > { %v1716_v54 = vcombine.low %v1518_v17, %v1520_v63  ;;  %v1723_v26 = vrot.slane %v1715_v60, %v2761_v28 }
 0x18b   : > { %v1730_v40 = vrot.slane %v1716_v54, %v2761_v28  ;;  %v1462_v22 = vpop.f32.mrb[0].mxu1 }
 0x18c   : > { %v1623_v55 = vcombine.high %v1462_v22, %v1462_v22  ;;  %v1630_v48 = vrot.slane %v1462_v22, %v2761_v28  ;;  %v2243_v45 = vpop.f32.mrb[1].mxu1 }
 0x18d   : > { %v1731_v0 = vcombine.low %v1723_v26, %v1730_v40 }
 0x18e   : > { %v1637_v10 = vrot.slane %v1623_v55, %v2761_v28  ;;  %v1638_v56 = vcombine.high %v1630_v48, %v1630_v48 }
 0x18f   : > { %1960 = vst [vmem:[%s2684_s28] sm:$0xff] %v1731_v0 }
 0x190   : > { %v1639_v14 = vcombine.high %v1637_v10, %v1637_v10  ;;  %v1847_v24 = vcombine.low %v1630_v48, %v1638_v56 }
 0x192   : > { %v1848_v13 = vcombine.low %v1637_v10, %v1639_v14  ;;  %v1855_v25 = vrot.slane %v1847_v24, %v2761_v28 }
 0x193   : > { %v1432_v6 = vpop.f32.mrb[2].mxu0 }
 0x194   : > { %v1862_v49 = vrot.slane %v1848_v13, %v2761_v28  ;;  %v1521_v34 = vcombine.high %v1432_v6, %v1432_v6  ;;  %v1528_v35 = vrot.slane %v1432_v6, %v2761_v28  ;;  %v2225_v18 = vpop.f32.mrb[3].mxu0 }
 0x196   : > { %v1863_v58 = vcombine.low %v1855_v25, %v1862_v49  ;;  %v1535_v46 = vrot.slane %v1521_v34, %v2761_v28  ;;  %v1536_v1 = vcombine.high %v1528_v35, %v1528_v35 }
 0x198   : > { %1968 = vst [vmem:[%s2684_s28 + $0x40] sm:$0xff] %v1863_v58  ;;  %v1732_v62 = vcombine.low %v1528_v35, %v1536_v1  ;;  %v1746_v4 = vrot.slane %v1535_v46, %v2761_v28  ;;  %v1537_v36 = vcombine.high %v1535_v46, %v1535_v46 }
 0x19a   : > { %v1739_v38 = vrot.slane %v1732_v62, %v2761_v28 }
 0x19c   : > { %v1747_v57 = vcombine.low %v1739_v38, %v1746_v4 }
 0x19e   : > { %1961 = vst [vmem:[%s2684_s28 + $0x8] sm:$0x3f] %v1747_v57 }
 0x1a6   : > { %v1467_v8 = vpop.f32.mrb[2].mxu1 }
 0x1a7   : > { %v1640_v41 = vcombine.high %v1467_v8, %v1467_v8  ;;  %v1647_v20 = vrot.slane %v1467_v8, %v2761_v28  ;;  %v2246_v16 = vpop.f32.mrb[3].mxu1 }
 0x1a9   : > { %v1654_v31 = vrot.slane %v1640_v41, %v2761_v28  ;;  %v1655_v23 = vcombine.high %v1647_v20, %v1647_v20 }
 0x1ab   : > { %v1864_v21 = vcombine.low %v1647_v20, %v1655_v23  ;;  %v1878_v29 = vrot.slane %v1654_v31, %v2761_v28  ;;  %v1656_v7 = vcombine.high %v1654_v31, %v1654_v31 }
 0x1ad   : > { %v1871_v61 = vrot.slane %v1864_v21, %v2761_v28 }
 0x1af   : > { %v1879_v3 = vcombine.low %v1871_v61, %v1878_v29 }
 0x1b1   : > { %v1437_v12 = vpop.f32.mrb[4].mxu0  ;;  %1969 = vst [vmem:[%s2684_s28 + $0x48] sm:$0x3f] %v1879_v3 }
 0x1b2   : > { %v1538_v27 = vcombine.high %v1437_v12, %v1437_v12  ;;  %v1545_v52 = vrot.slane %v1437_v12, %v2761_v28  ;;  %v2228_v42 = vpop.f32.mrb[5].mxu0 }
 0x1b3   : > { %v1472_v59 = vpop.f32.mrb[4].mxu1 }
 0x1b4   : > { %v1552_v19 = vrot.slane %v1538_v27, %v2761_v28  ;;  %v1553_v47 = vcombine.high %v1545_v52, %v1545_v52  ;;  %v1748_v44 = vcombine.low %v1537_v36, %v1545_v52  ;;  %v1657_v5 = vcombine.high %v1472_v59, %v1472_v59  ;;  %v2249_v15 = vpop.f32.mrb[5].mxu1 }
 0x1b5   : > { %v1664_v11 = vrot.slane %v1472_v59, %v2761_v28 }
 0x1b6   : > { %v1749_v32 = vcombine.low %v1553_v47, %v1552_v19  ;;  %v1756_v53 = vrot.slane %v1748_v44, %v2761_v28  ;;  %v1671_v50 = vrot.slane %v1657_v5, %v2761_v28  ;;  %v1554_v39 = vcombine.high %v1552_v19, %v1552_v19 }
 0x1b7   : > { %v1672_v33 = vcombine.high %v1664_v11, %v1664_v11  ;;  %v1880_v30 = vcombine.low %v1656_v7, %v1664_v11 }
 0x1b8   : > { %v1763_v37 = vrot.slane %v1749_v32, %v2761_v28  ;;  %v1673_v0 = vcombine.high %v1671_v50, %v1671_v50 }
 0x1b9   : > { %v1881_v51 = vcombine.low %v1672_v33, %v1671_v50  ;;  %v1888_v9 = vrot.slane %v1880_v30, %v2761_v28 }
 0x1ba   : > { %v1764_v43 = vcombine.low %v1756_v53, %v1763_v37 }
 0x1bb   : > { %v1895_v2 = vrot.slane %v1881_v51, %v2761_v28 }
 0x1bc   : > { %1962 = vst [vmem:[%s2684_s28 + $0x10] sm:$0xff] %v1764_v43 }
 0x1bd   : > { %v1896_v17 = vcombine.low %v1888_v9, %v1895_v2 }
 0x1bf   : > { %v1442_v63 = vpop.f32.mrb[6].mxu0  ;;  %1970 = vst [vmem:[%s2684_s28 + $0x50] sm:$0xff] %v1896_v17 }
 0x1c0   : > { %v1562_v60 = vrot.slane %v1442_v63, %v2761_v28  ;;  %v2231_v54 = vpop.f32.mrb[7].mxu0  ;;  %v1555_v45 = vcombine.high %v1442_v63, %v1442_v63 }
 0x1c2   : > { %v1570_v26 = vcombine.high %v1562_v60, %v1562_v60  ;;  %v1765_v40 = vcombine.low %v1554_v39, %v1562_v60  ;;  %v1569_v13 = vrot.slane %v1555_v45, %v2761_v28 }
 0x1c4   : > { %v1772_v22 = vrot.slane %v1765_v40, %v2761_v28  ;;  %v1779_v55 = vrot.slane %v1570_v26, %v2761_v28  ;;  %v1571_v18 = vcombine.high %v1569_v13, %v1569_v13 }
 0x1c6   : > { %v1780_v48 = vcombine.low %v1772_v22, %v1779_v55  ;;  %v1781_v57 = vcombine.low %v1569_v13, %v1571_v18 }
 0x1c8   : > { %1963 = vst [vmem:[%s2684_s28 + $0x18] sm:$0x3f] %v1780_v48  ;;  %v1789_v61 = vrot.slane %v1781_v57, %v2761_v28 }
 0x1cf   : > { %v1477_v10 = vpop.f32.mrb[6].mxu1 }
 0x1d0   : > { %v1674_v56 = vcombine.high %v1477_v10, %v1477_v10  ;;  %v1681_v14 = vrot.slane %v1477_v10, %v2761_v28  ;;  %v2252_v24 = vpop.f32.mrb[7].mxu1 }
 0x1d2   : > { %v1688_v25 = vrot.slane %v1674_v56, %v2761_v28  ;;  %v1689_v6 = vcombine.high %v1681_v14, %v1681_v14  ;;  %v1897_v49 = vcombine.low %v1673_v0, %v1681_v14 }
 0x1d4   : > { %v1904_v34 = vrot.slane %v1897_v49, %v2761_v28  ;;  %v1911_v35 = vrot.slane %v1689_v6, %v2761_v28  ;;  %v1690_v46 = vcombine.high %v1688_v25, %v1688_v25 }
 0x1d6   : > { %v1912_v1 = vcombine.low %v1904_v34, %v1911_v35  ;;  %v1913_v20 = vcombine.low %v1688_v25, %v1690_v46 }
 0x1d7   : > { %v1447_v58 = vpop.f32.mrb[8].mxu0 }
 0x1d8   : > { %v1572_v62 = vcombine.high %v1447_v58, %v1447_v58  ;;  %v1579_v38 = vrot.slane %v1447_v58, %v2761_v28  ;;  %v2234_v4 = vpop.f32.mrb[9].mxu0  ;;  %1971 = vst [vmem:[%s2684_s28 + $0x58] sm:$0x3f] %v1912_v1  ;;  %v1921_v47 = vrot.slane %v1913_v20, %v2761_v28 }
 0x1da   : > { %v1586_v8 = vrot.slane %v1572_v62, %v2761_v28  ;;  %v1587_v41 = vcombine.high %v1579_v38, %v1579_v38  ;;  %v1482_v16 = vpop.f32.mrb[8].mxu1 }
 0x1db   : > { %v1691_v21 = vcombine.high %v1482_v16, %v1482_v16  ;;  %v1698_v29 = vrot.slane %v1482_v16, %v2761_v28  ;;  %v2255_v36 = vpop.f32.mrb[9].mxu1 }
 0x1dc   : > { %v1588_v31 = vcombine.high %v1586_v8, %v1586_v8  ;;  %v1782_v23 = vcombine.low %v1579_v38, %v1587_v41 }
 0x1dd   : > { %v1705_v27 = vrot.slane %v1691_v21, %v2761_v28  ;;  %v1706_v52 = vcombine.high %v1698_v29, %v1698_v29 }
 0x1de   : > { %v1796_v12 = vrot.slane %v1782_v23, %v2761_v28  ;;  %v1798_v3 = vcombine.low %v1586_v8, %v1588_v31  ;;  %v1487_v42 = vpop.f32.mrb[10].mxu1 }
 0x1df   : > { %v1707_v44 = vcombine.high %v1705_v27, %v1705_v27  ;;  %v1914_v59 = vcombine.low %v1698_v29, %v1706_v52  ;;  %v2258_v7 = vpop.f32.mrb[11].mxu1  ;;  %v1714_v32 = vrot.slane %v1487_v42, %v2761_v28 }
 0x1e0   : > { %v1797_v19 = vcombine.low %v1789_v61, %v1796_v12  ;;  %v1805_v37 = vrot.slane %v1798_v3, %v2761_v28 }
 0x1e1   : > { %v1928_v5 = vrot.slane %v1914_v59, %v2761_v28  ;;  %v1930_v15 = vcombine.low %v1705_v27, %v1707_v44  ;;  %v1452_v11 = vpop.f32.mrb[10].mxu0  ;;  %v1944_v33 = vrot.slane %v1714_v32, %v2761_v28 }
 0x1e2   : > { %1964 = vst [vmem:[%s2684_s28 + $0x20] sm:$0xff] %v1797_v19  ;;  %v1596_v53 = vrot.slane %v1452_v11, %v2761_v28  ;;  %v2237_v50 = vpop.f32.mrb[11].mxu0  ;;  %v1589_v51 = vcombine.high %v1452_v11, %v1452_v11 }
 0x1e3   : > { %v1929_v30 = vcombine.low %v1921_v47, %v1928_v5  ;;  %v1937_v43 = vrot.slane %v1930_v15, %v2761_v28 }
 0x1e4   : > { %v1812_v9 = vrot.slane %v1596_v53, %v2761_v28  ;;  %v1603_v39 = vrot.slane %v1589_v51, %v2761_v28  ;;  %v1604_v63 = vcombine.high %v1596_v53, %v1596_v53 }
 0x1e5   : > { %1972 = vst [vmem:[%s2684_s28 + $0x60] sm:$0xff] %v1929_v30  ;;  %v1945_v2 = vcombine.low %v1937_v43, %v1944_v33 }
 0x1e6   : > { %v1813_v17 = vcombine.low %v1805_v37, %v1812_v9  ;;  %v1605_v60 = vcombine.high %v1603_v39, %v1603_v39  ;;  %v1814_v26 = vcombine.low %v1604_v63, %v1603_v39 }
 0x1e7   : > { %1973 = vst [vmem:[%s2684_s28 + $0x68] sm:$0x3f] %v1945_v2 }
 0x1e8   : > { %1965 = vst [vmem:[%s2684_s28 + $0x28] sm:$0x3f] %v1813_v17  ;;  %v1822_v10 = vrot.slane %v1814_v26, %v2761_v28 }
 0x1ed   : > { %v1457_v54 = vpop.f32.mrb[12].mxu0 }
 0x1ee   : > { %v1606_v40 = vcombine.high %v1457_v54, %v1457_v54  ;;  %v1613_v22 = vrot.slane %v1457_v54, %v2761_v28  ;;  %v2240_v55 = vpop.f32.mrb[13].mxu0 }
 0x1f0   : > { %v1620_v48 = vrot.slane %v1606_v40, %v2761_v28  ;;  %v1621_v45 = vcombine.high %v1613_v22, %v1613_v22  ;;  %v1815_v0 = vcombine.low %v1605_v60, %v1613_v22 }
 0x1f2   : > { %v1622_v56 = vcombine.high %v1620_v48, %v1620_v48  ;;  %v1829_v14 = vrot.slane %v1815_v0, %v2761_v28  ;;  %v1831_v24 = vcombine.low %v1621_v45, %v1620_v48 }
 0x1f4   : > { %v1830_v13 = vcombine.low %v1822_v10, %v1829_v14  ;;  %v1838_v25 = vrot.slane %v1831_v24, %v2761_v28  ;;  %v1845_v6 = vrot.slane %v1622_v56, %v2761_v28 }
 0x1f6   : > { %v1846_v49 = vcombine.low %v1838_v25, %v1845_v6  ;;  %1966 = vst [vmem:[%s2684_s28 + $0x30] sm:$0xff] %v1830_v13 }
 0x1f8   : > { %1967 = vst [vmem:[%s2684_s28 + $0x38] sm:$0x3f] %v1846_v49 }
 0x1f9 PF: > { %s15_s16 = sadd.s32 1, %s2537_s16   ;;  %s3625_s12 = smov %s2529_s14 }
 0x1fa   : > { %p12_p0 = scmp.ge.s32.totalorder %s15_s16, 6   ;;  %s3626_s13 = smov %s2533_s15 }
 0x1fb   : > { %s3627_s14 = smov %s3630_s18  ;;  %s3628_s15 = smov %s3634_s19 }
 0x1fc   :  { %14 = sbr.rel (!%p12_p0) target bundleno = 4 (0x4), region = 89 }
 0x203   :  { %2006 = vsyncpa [#allocation5], 1 }
 0x204   :  { %2008 = vsyncpa [#allocation5 + $0x1], 1 }
 0x205   :  { %2009 = vsyncpa [#allocation7], 1 }
 0x206   :  { %2010 = vsyncmov [#allocation3] }
 0x209   :  { %s2011_s28 = vpop.sfrf %2010 }
 0x20a   :  { %p2156_p4 = scmp.ne.s32.totalorder %s2011_s28, 0 }
 0x20c   :  { %2015 = shalt.err (%p2156_p4)  }
 0x20d   :  { %2017 = vsyncmov [#allocation3 + $0x1] }
 0x210   :  { %s2018_s6 = vpop.sfrf %2017 }
 0x211   :  { %p2157_p6 = scmp.ne.s32.totalorder %s2018_s6, 0 }
 0x213   :  { %2022 = shalt.err (%p2157_p6)  }

</bundles_post_ra>
